<compile_context>
chip_gen: v6e
topology: v6e:2x2x1
jax: 0.10.0
libtpu: 0.0.40
codegen_flags: <defaults>
</compile_context>

<pallas_src>
import functools
import math

import jax
import jax.numpy as jnp
from jax.experimental import pallas as pl
from jax.experimental.pallas import tpu as pltpu

COMPUTE_DTYPE = jnp.bfloat16    # MXU operand dtype; accumulation / elementwise stay f32
ATTN_MAP_DTYPE = jnp.bfloat16   # dtype of the (L,B,S,S) attention-map writebacks


# ----------------------------- in-kernel helpers -----------------------------

def _layernorm(x, eps=1e-5):
    # single reduction pass: var = E[x^2] - mean^2 (one fewer XLU pass per call)
    mean = jnp.mean(x, axis=-1, keepdims=True)
    mean_sq = jnp.mean(x * x, axis=-1, keepdims=True)
    var = mean_sq - mean * mean
    return (x - mean) * jax.lax.rsqrt(var + eps)


def _vmem_limit_bytes():
    # derive the scoped-VMEM limit per generation instead of hardcoding 32 MiB
    try:
        cap = int(pltpu.get_tpu_info().vmem_capacity_bytes)
    except Exception:
        cap = 128 * 1024 * 1024
    return max(32 * 1024 * 1024, (cap * 3) // 4)


# ------------------------------ Pallas kernels --------------------------------

def decoder_stack_kernel(x0_ref, enc_ref, tok_ref,
                         wqkv_ref, bqkv_ref, wo_ref, bo_ref,
                         w1_ref, b1_ref, w2_ref, b2_ref,
                         x_out_ref, *attn_refs, hd):
    """Whole decoder stack.  grid = (batch_shards, n_layers).

    The layer axis is sequential ("arbitrary"): the running activation is carried
    in x_out_ref, whose block index is constant across layers, so it stays
    VMEM-resident and is written back to HBM only once per batch shard.
    """
    layer = pl.program_id(1)
    Bs, S, D = x_out_ref.shape
    cdt = COMPUTE_DTYPE

    @pl.when(layer == 0)
    def _():
        x_out_ref[...] = x0_ref[...]        # seed the resident carry with the embeddings

    x = x_out_ref[...]                      # (Bs, S, D) f32  (previous layer's output)
    enc = enc_ref[...]                      # (Bs, S, D) f32

    # masks generated in-kernel: no S^2 float32 mask DMA from HBM.
    row = jax.lax.broadcasted_iota(jnp.int32, (S, S), 0)
    col = jax.lax.broadcasted_iota(jnp.int32, (S, S), 1)
    causal_mask = (col > row)[None, :, :]   # (1, S, S) bool  (triu, diagonal=1)
    pad_mask = (tok_ref[...] == 0)          # (Bs, 1, S) bool (token id == 0)

    wqkv = wqkv_ref[0]                      # (D, 3*HD) bf16  (Q columns pre-scaled)
    bqkv = bqkv_ref[0]                      # (1, 3*HD) f32
    wo, bo = wo_ref[0], bo_ref[0]
    w1, b1 = w1_ref[0], b1_ref[0]
    w2, b2 = w2_ref[0], b2_ref[0]

    def attend(q, k, v, q_in, mask):
        # q,k,v: (Bs,S,HD) f32 ; q_in: (Bs,S,D) f32 ; mask broadcasts to (Bs,S,S)
        # 1/sqrt(d_k) already folded into the Q weights -> no score-scale pass here.
        s = jnp.einsum("bqd,bkd->bqk", q.astype(cdt), k.astype(cdt),
                       preferred_element_type=jnp.float32)
        # reference: attention_scores.masked_fill_(attn_mask, 1e-09)
        s = jnp.where(mask, jnp.float32(1e-9), s)
        m = jnp.max(s, axis=-1, keepdims=True)
        e = jnp.exp(s - m)
        attn = e * pl.reciprocal(jnp.sum(e, axis=-1, keepdims=True), approx=True)
        ctx = jnp.einsum("bqk,bkd->bqd", attn.astype(cdt), v.astype(cdt),
                         preferred_element_type=jnp.float32) + q_in     # context += q
        o = jnp.dot(ctx.reshape(Bs * S, hd).astype(cdt), wo,
                    preferred_element_type=jnp.float32) + bo
        return _layernorm(o).reshape(Bs, S, D), attn

    # --- masked self-attention: fused QKV matmul (one MXU pass, N = 3*HD) ---
    x2d = x.reshape(Bs * S, D)
    qkv = jnp.dot(x2d.astype(cdt), wqkv, preferred_element_type=jnp.float32) + bqkv
    q = qkv[:, :hd].reshape(Bs, S, hd)
    k = qkv[:, hd:2 * hd].reshape(Bs, S, hd)
    v = qkv[:, 2 * hd:].reshape(Bs, S, hd)
    h1, self_attn = attend(q, k, v, x, causal_mask)

    # --- "cross" attention (reference reuses the SAME MHA weights) ---
    q2 = jnp.dot(h1.reshape(Bs * S, D).astype(cdt), wqkv[:, :hd],
                 preferred_element_type=jnp.float32) + bqkv[:, :hd]
    kv = jnp.dot(enc.reshape(Bs * S, D).astype(cdt), wqkv[:, hd:],
                 preferred_element_type=jnp.float32) + bqkv[:, hd:]
    k2 = kv[:, :hd].reshape(Bs, S, hd)
    v2 = kv[:, hd:].reshape(Bs, S, hd)
    h2, enc_attn = attend(q2.reshape(Bs, S, hd), k2, v2, h1, pad_mask)

    # --- feed-forward: LN(relu(x W1 + b1) W2 + b2 + residual) ---
    h2_2d = h2.reshape(Bs * S, D)
    hid = jnp.maximum(
        jnp.dot(h2_2d.astype(cdt), w1, preferred_element_type=jnp.float32) + b1, 0.0)
    ffn = jnp.dot(hid.astype(cdt), w2, preferred_element_type=jnp.float32) + b2
    x_new = _layernorm(ffn + h2_2d).reshape(Bs, S, D)

    x_out_ref[...] = x_new                  # resident carry; HBM writeback after last layer
    if attn_refs:                           # static Python: attention maps are opt-in
        sattn_ref, eattn_ref = attn_refs
        sattn_ref[0] = self_attn.astype(sattn_ref.dtype)   # bf16 -> half the HBM traffic
        eattn_ref[0] = enc_attn.astype(eattn_ref.dtype)


def output_kernel(x_ref, w_ref, b_ref, out_ref):
    """Final projection to vocab + softmax on one row block (W_out resident)."""
    logits = jnp.dot(x_ref[...].astype(COMPUTE_DTYPE), w_ref[...],
                     preferred_element_type=jnp.float32) + b_ref[...]
    m = jnp.max(logits, axis=-1, keepdims=True)
    e = jnp.exp(logits - m)
    # exact division here (called once): output probabilities sum to 1.
    out_ref[...] = e / jnp.sum(e, axis=-1, keepdims=True)


# ------------------------------ wrappers --------------------------------------

def run_decoder_stack(x0, enc, tokens, params, *, num_batch_shards=1, collect_attn=True):
    B, S, D = x0.shape
    L, _, HD3 = params["wqkv"].shape
    HD = HD3 // 3
    F = params["w1"].shape[2]
    assert HD == D, "`context += q` in the reference requires n_heads*d_k == d_model"
    NB = num_batch_shards
    assert B % NB == 0
    Bs = B // NB

    tok3 = tokens.reshape(B, 1, S).astype(jnp.int32)

    def act_spec(last):
        return pl.BlockSpec((Bs, S, last), lambda nb, l: (nb, 0, 0))

    def w_spec(a, b):
        return pl.BlockSpec((1, a, b), lambda nb, l: (l, 0, 0))

    in_specs = [
        act_spec(D),                                          # x0 (embedded tokens)
        act_spec(D),                                          # encoder outputs
        pl.BlockSpec((Bs, 1, S), lambda nb, l: (nb, 0, 0)),   # token ids (pad mask)
        w_spec(D, 3 * HD), w_spec(1, 3 * HD),                 # fused QKV (Q pre-scaled)
        w_spec(HD, D), w_spec(1, D),                          # output projection
        w_spec(D, F), w_spec(1, F),                           # FFN up
        w_spec(F, D), w_spec(1, D),                           # FFN down
    ]
    x_spec = act_spec(D)                                      # constant across layer axis
    x_shape = jax.ShapeDtypeStruct((B, S, D), jnp.float32)
    if collect_attn:
        attn_spec = pl.BlockSpec((1, Bs, S, S), lambda nb, l: (l, nb, 0, 0))
        out_specs = (x_spec, attn_spec, attn_spec)
        out_shape = (x_shape,
                     jax.ShapeDtypeStruct((L, B, S, S), ATTN_MAP_DTYPE),
                     jax.ShapeDtypeStruct((L, B, S, S), ATTN_MAP_DTYPE))
    else:
        out_specs = x_spec
        out_shape = x_shape

    kernel = functools.partial(decoder_stack_kernel, hd=HD)
    return pl.pallas_call(
        kernel,
        grid=(NB, L),
        in_specs=in_specs,
        out_specs=out_specs,
        out_shape=out_shape,
        compiler_params=pltpu.CompilerParams(
            dimension_semantics=("parallel", "arbitrary"),
            vmem_limit_bytes=_vmem_limit_bytes()),
    )(x0, enc, tok3,
      params["wqkv"], params["bqkv"], params["wo"], params["bo"],
      params["w1"], params["b1"], params["w2"], params["b2"])


def _pick_row_block(rows, target=256):
    if rows <= target:
        return rows
    for cand in (target, 128, 64, 32, 16, 8):
        if rows % cand == 0:
            return cand
    return rows


def run_output_layer(x, wout, bout):
    B, S, D = x.shape
    V = wout.shape[1]
    R = B * S
    x2d = x.reshape(R, D)
    tm = _pick_row_block(R)
    # Row-block tiling ("parallel" -> second TC on v7x takes half the rows);
    # W_out block index is constant -> stays VMEM-resident across row blocks.
    out = pl.pallas_call(
        output_kernel,
        grid=(R // tm,),
        in_specs=[pl.BlockSpec((tm, D), lambda i: (i, 0)),
                  pl.BlockSpec((D, V), lambda i: (0, 0)),
                  pl.BlockSpec((1, V), lambda i: (0, 0))],
        out_specs=pl.BlockSpec((tm, V), lambda i: (i, 0)),
        out_shape=jax.ShapeDtypeStruct((R, V), jnp.float32),
        compiler_params=pltpu.CompilerParams(
            dimension_semantics=("parallel",),
            vmem_limit_bytes=_vmem_limit_bytes()),
    )(x2d, wout, bout)
    return out.reshape(B, S, V)


def decoder_forward(tokens, enc_outs, emb_table, pos_table_arr, params, wout, bout,
                    *, num_batch_shards=1, collect_attn=True):
    B, S = tokens.shape
    # glue outside the kernels: embedding lookup (gather) + positional embedding add
    x0 = emb_table[tokens] + pos_table_arr[None, :S, :]
    res = run_decoder_stack(x0, enc_outs, tokens, params,
                            num_batch_shards=num_batch_shards,
                            collect_attn=collect_attn)
    if collect_attn:
        x, sattn, eattn = res
    else:
        x, sattn, eattn = res, None, None
    out = run_output_layer(x, wout, bout)
    if collect_attn:
        L = sattn.shape[0]
        return out, [sattn[l] for l in range(L)], [eattn[l] for l in range(L)]
    return out, [], []


# ------------------------- parameter / table setup -----------------------------

def position_table(d_model, max_len):
    pos = jnp.arange(max_len, dtype=jnp.float32)[:, None]
    i = jnp.arange(d_model, dtype=jnp.float32)[None, :]
    angle = pos / jnp.power(10000.0, 2.0 * i / d_model)
    angle = jnp.where(pos == 0, 0.0, angle)  # reference zeroes the pos==0 row pre sin/cos
    pe = angle
    pe = pe.at[:, 0::2].set(jnp.sin(angle[:, 0::2]))
    pe = pe.at[:, 1::2].set(jnp.cos(angle[:, 1::2]))
    return pe.astype(jnp.float32)


def init_layer(key, d_model, hd, d_ffn):
    ks = jax.random.split(key, 6)
    s = 0.05
    return dict(
        wq=jax.random.normal(ks[0], (d_model, hd), jnp.float32) * s, bq=jnp.zeros((1, hd), jnp.float32),
        wk=jax.random.normal(ks[1], (d_model, hd), jnp.float32) * s, bk=jnp.zeros((1, hd), jnp.float32),
        wv=jax.random.normal(ks[2], (d_model, hd), jnp.float32) * s, bv=jnp.zeros((1, hd), jnp.float32),
        wo=jax.random.normal(ks[3], (hd, d_model), jnp.float32) * s, bo=jnp.zeros((1, d_model), jnp.float32),
        w1=jax.random.normal(ks[4], (d_model, d_ffn), jnp.float32) * s, b1=jnp.zeros((1, d_ffn), jnp.float32),
        w2=jax.random.normal(ks[5], (d_ffn, d_model), jnp.float32) * s, b2=jnp.zeros((1, d_model), jnp.float32),
    )


def pack_layers(layers, d_k):
    """Stack per-layer weights along L; fuse Wq/Wk/Wv (Q pre-scaled by 1/sqrt(d_k)); bf16."""
    cdt = COMPUTE_DTYPE
    scale = 1.0 / math.sqrt(d_k)   # folded here -> no per-score multiply in the kernel

    def qkv_w(p):
        return jnp.concatenate([p["wq"] * scale, p["wk"], p["wv"]], axis=1)

    def qkv_b(p):
        return jnp.concatenate([p["bq"] * scale, p["bk"], p["bv"]], axis=1)

    return dict(
        wqkv=jnp.stack([qkv_w(p) for p in layers]).astype(cdt),
        bqkv=jnp.stack([qkv_b(p) for p in layers]),
        wo=jnp.stack([p["wo"] for p in layers]).astype(cdt),
        bo=jnp.stack([p["bo"] for p in layers]),
        w1=jnp.stack([p["w1"] for p in layers]).astype(cdt),
        b1=jnp.stack([p["b1"] for p in layers]),
        w2=jnp.stack([p["w2"] for p in layers]).astype(cdt),
        b2=jnp.stack([p["b2"] for p in layers]),
    )


# ------------------------------ pure-JAX reference -----------------------------
# Mirrors the kernel's dtype policy exactly (bf16 MXU operands, f32 accumulation,
# f32 elementwise, Q pre-scaled weights) so the comparison isolates kernel correctness.

def ref_forward(tokens, enc_outs, emb_table, pos_table_arr, params, wout, bout):
    cdt = COMPUTE_DTYPE
    B, S = tokens.shape
    L, _, HD3 = params["wqkv"].shape
    HD = HD3 // 3
    x = emb_table[tokens] + pos_table_arr[None, :S, :]
    causal = jnp.triu(jnp.ones((S, S), jnp.bool_), k=1)[None]
    pad = (tokens == 0)[:, None, :]

    def lin(a, w, b):
        return jnp.einsum("bsd,df->bsf", a.astype(cdt), w,
                          preferred_element_type=jnp.float32) + b

    self_attns, enc_attns = [], []
    for l in range(L):
        wqkv, bqkv = params["wqkv"][l], params["bqkv"][l]
        wo, bo = params["wo"][l], params["bo"][l]
        w1, b1 = params["w1"][l], params["b1"][l]
        w2, b2 = params["w2"][l], params["b2"][l]

        def mha(qi, ki, vi, mask):
            q = lin(qi, wqkv[:, :HD], bqkv[:, :HD])               # scale already folded
            k = lin(ki, wqkv[:, HD:2 * HD], bqkv[:, HD:2 * HD])
            v = lin(vi, wqkv[:, 2 * HD:], bqkv[:, 2 * HD:])
            s = jnp.einsum("bqd,bkd->bqk", q.astype(cdt), k.astype(cdt),
                           preferred_element_type=jnp.float32)
            s = jnp.where(mask, jnp.float32(1e-9), s)
            a = jax.nn.softmax(s, axis=-1)
            c = jnp.einsum("bqk,bkd->bqd", a.astype(cdt), v.astype(cdt),
                           preferred_element_type=jnp.float32) + qi
            return _layernorm(lin(c, wo, bo)), a

        h1, sa = mha(x, x, x, causal)
        h2, ea = mha(h1, enc_outs, enc_outs, pad)
        ffn = lin(jnp.maximum(lin(h2, w1, b1), 0.0), w2, b2)
        x = _layernorm(ffn + h2)
        self_attns.append(sa)
        enc_attns.append(ea)

    out = jax.nn.softmax(
        jnp.einsum("bsd,dv->bsv", x.astype(cdt), wout,
                   preferred_element_type=jnp.float32) + bout, axis=-1)
    return out, self_attns, enc_attns


# ------------------------------------ main -------------------------------------

if __name__ == "__main__":
    B, S = 2, 8
    d_model, d_k, n_heads, d_ffn = 32, 8, 4, 64   # n_heads*d_k == d_model (required by `context += q`)
    vocab_size, max_len, n_layers = 16, 16, 2

    key = jax.random.PRNGKey(0)
    keys = jax.random.split(key, 4 + n_layers)
    k_emb, k_tok, k_enc, k_out = keys[0], keys[1], keys[2], keys[3]
    layer_keys = keys[4:]

    emb_table = jax.random.normal(k_emb, (vocab_size, d_model), jnp.float32) * 0.1
    pos_tab = position_table(d_model, max_len)
    layers = [init_layer(layer_keys[i], d_model, n_heads * d_k, d_ffn)
              for i in range(n_layers)]
    params = pack_layers(layers, d_k)
    wout = (jax.random.normal(k_out, (d_model, vocab_size), jnp.float32) * 0.05
            ).astype(COMPUTE_DTYPE)
    bout = jnp.zeros((1, vocab_size), jnp.float32)

    tokens = jax.random.randint(k_tok, (B, S), 0, vocab_size)   # includes possible pad id 0
    enc_outs = jax.random.normal(k_enc, (B, S, d_model), jnp.float32)

    # num_batch_shards=1 keeps the full batch fused (best MXU fill on v5e/v6e single TC);
    # set to 2 on TPU v7x to shard the batch across both TensorCores.
    out, self_attns, enc_attns = decoder_forward(
        tokens, enc_outs, emb_table, pos_tab, params, wout, bout,
        num_batch_shards=1, collect_attn=True)
    out = jax.block_until_ready(out)

    # correctness check against a pure-JAX reference with the same dtype policy
    r_out, r_sa, r_ea = ref_forward(
        tokens, enc_outs, emb_table, pos_tab, params, wout, bout)
    assert out.shape == (B, S, vocab_size)
    assert jnp.allclose(out, r_out, atol=5e-3, rtol=5e-3)
    for a, b in zip(self_attns, r_sa):
        assert jnp.allclose(a.astype(jnp.float32), b, atol=2e-2, rtol=2e-2)  # bf16 maps
    for a, b in zip(enc_attns, r_ea):
        assert jnp.allclose(a.astype(jnp.float32), b, atol=2e-2, rtol=2e-2)

    print("KERNEL_OK")
</pallas_src>

<mosaic_0001>
module attributes {stable_mosaic.version = 11 : i64} {
  func.func @decoder_stack_kernel(%arg0: i32, %arg1: i32, %arg2: memref<2x8x32xf32, #tpu.memory_space<vmem>>, %arg3: memref<2x8x32xf32, #tpu.memory_space<vmem>>, %arg4: memref<2x1x8xi32, #tpu.memory_space<vmem>>, %arg5: memref<1x32x96xbf16, #tpu.memory_space<vmem>>, %arg6: memref<1x1x96xf32, #tpu.memory_space<vmem>>, %arg7: memref<1x32x32xbf16, #tpu.memory_space<vmem>>, %arg8: memref<1x1x32xf32, #tpu.memory_space<vmem>>, %arg9: memref<1x32x64xbf16, #tpu.memory_space<vmem>>, %arg10: memref<1x1x64xf32, #tpu.memory_space<vmem>>, %arg11: memref<1x64x32xbf16, #tpu.memory_space<vmem>>, %arg12: memref<1x1x32xf32, #tpu.memory_space<vmem>>, %arg13: memref<2x8x32xf32, #tpu.memory_space<vmem>>, %arg14: memref<1x2x8x8xbf16, #tpu.memory_space<vmem>>, %arg15: memref<1x2x8x8xbf16, #tpu.memory_space<vmem>>) attributes {dimension_semantics = [#tpu.dimension_semantics<parallel>, #tpu.dimension_semantics<arbitrary>], iteration_bounds = array<i64: 1, 2>, scalar_prefetch = 0 : i64, scratch_operands = 0 : i64, tpu.core_type = #tpu.core_type<tc>, window_params = [{transform_indices = @transform_0, window_bounds = array<i64: 2, 8, 32>}, {transform_indices = @transform_1, window_bounds = array<i64: 2, 8, 32>}, {transform_indices = @transform_2, window_bounds = array<i64: 2, 1, 8>}, {transform_indices = @transform_3, window_bounds = array<i64: 1, 32, 96>}, {transform_indices = @transform_4, window_bounds = array<i64: 1, 1, 96>}, {transform_indices = @transform_5, window_bounds = array<i64: 1, 32, 32>}, {transform_indices = @transform_6, window_bounds = array<i64: 1, 1, 32>}, {transform_indices = @transform_7, window_bounds = array<i64: 1, 32, 64>}, {transform_indices = @transform_8, window_bounds = array<i64: 1, 1, 64>}, {transform_indices = @transform_9, window_bounds = array<i64: 1, 64, 32>}, {transform_indices = @transform_10, window_bounds = array<i64: 1, 1, 32>}, {transform_indices = @transform_11, window_bounds = array<i64: 2, 8, 32>}, {transform_indices = @transform_12, window_bounds = array<i64: 1, 2, 8, 8>}, {transform_indices = @transform_13, window_bounds = array<i64: 1, 2, 8, 8>}]} {
    %c0_i32 = arith.constant 0 : i32
    %0 = arith.cmpi eq, %arg1, %c0_i32 : i32
    %1 = arith.extui %0 : i1 to i32
    %c0_i32_0 = arith.constant 0 : i32
    %2 = arith.cmpi ne, %1, %c0_i32_0 : i32
    scf.if %2 {
      %c0_77 = arith.constant 0 : index
      %c0_78 = arith.constant 0 : index
      %c0_79 = arith.constant 0 : index
      %188 = vector.load %arg2[%c0_77, %c0_78, %c0_79] : memref<2x8x32xf32, #tpu.memory_space<vmem>>, vector<2x8x32xf32>
      %c0_80 = arith.constant 0 : index
      %c0_81 = arith.constant 0 : index
      %c0_82 = arith.constant 0 : index
      %189 = vector.load %arg13[%c0_80, %c0_81, %c0_82] : memref<2x8x32xf32, #tpu.memory_space<vmem>>, vector<2x8x32xf32>
      tpu.vector_store %arg13[%c0_80, %c0_81, %c0_82], %188 {strides = array<i32>} : memref<2x8x32xf32, #tpu.memory_space<vmem>>, vector<2x8x32xf32>,
    } else {
    }
    %c0 = arith.constant 0 : index
    %c0_1 = arith.constant 0 : index
    %c0_2 = arith.constant 0 : index
    %3 = vector.load %arg13[%c0, %c0_1, %c0_2] : memref<2x8x32xf32, #tpu.memory_space<vmem>>, vector<2x8x32xf32>
    %c0_3 = arith.constant 0 : index
    %c0_4 = arith.constant 0 : index
    %c0_5 = arith.constant 0 : index
    %4 = vector.load %arg3[%c0_3, %c0_4, %c0_5] : memref<2x8x32xf32, #tpu.memory_space<vmem>>, vector<2x8x32xf32>
    %5 = tpu.iota {dimensions = array<i32: 0>} : vector<8x8xi32>
    %6 = tpu.iota {dimensions = array<i32: 1>} : vector<8x8xi32>
    %7 = arith.cmpi sgt, %6, %5 : vector<8x8xi32>
    %8 = vector.shape_cast %7 : vector<8x8xi1> to vector<1x8x8xi1>
    %c0_6 = arith.constant 0 : index
    %c0_7 = arith.constant 0 : index
    %c0_8 = arith.constant 0 : index
    %9 = vector.load %arg4[%c0_6, %c0_7, %c0_8] : memref<2x1x8xi32, #tpu.memory_space<vmem>>, vector<2x1x8xi32>
    %c0_i32_9 = arith.constant 0 : i32
    %10 = vector.broadcast %c0_i32_9 : i32 to vector<2x1x8xi32>
    %11 = arith.cmpi eq, %9, %10 : vector<2x1x8xi32>
    %c0_10 = arith.constant 0 : index
    %c0_11 = arith.constant 0 : index
    %c0_12 = arith.constant 0 : index
    %12 = vector.load %arg5[%c0_10, %c0_11, %c0_12] : memref<1x32x96xbf16, #tpu.memory_space<vmem>>, vector<1x32x96xbf16>
    %13 = vector.shape_cast %12 : vector<1x32x96xbf16> to vector<32x96xbf16>
    %c0_13 = arith.constant 0 : index
    %c0_14 = arith.constant 0 : index
    %c0_15 = arith.constant 0 : index
    %14 = vector.load %arg6[%c0_13, %c0_14, %c0_15] : memref<1x1x96xf32, #tpu.memory_space<vmem>>, vector<1x1x96xf32>
    %15 = vector.shape_cast %14 : vector<1x1x96xf32> to vector<1x96xf32>
    %c0_16 = arith.constant 0 : index
    %c0_17 = arith.constant 0 : index
    %c0_18 = arith.constant 0 : index
    %16 = vector.load %arg7[%c0_16, %c0_17, %c0_18] : memref<1x32x32xbf16, #tpu.memory_space<vmem>>, vector<1x32x32xbf16>
    %17 = vector.shape_cast %16 : vector<1x32x32xbf16> to vector<32x32xbf16>
    %c0_19 = arith.constant 0 : index
    %c0_20 = arith.constant 0 : index
    %c0_21 = arith.constant 0 : index
    %18 = vector.load %arg8[%c0_19, %c0_20, %c0_21] : memref<1x1x32xf32, #tpu.memory_space<vmem>>, vector<1x1x32xf32>
    %19 = vector.shape_cast %18 : vector<1x1x32xf32> to vector<1x32xf32>
    %c0_22 = arith.constant 0 : index
    %c0_23 = arith.constant 0 : index
    %c0_24 = arith.constant 0 : index
    %20 = vector.load %arg9[%c0_22, %c0_23, %c0_24] : memref<1x32x64xbf16, #tpu.memory_space<vmem>>, vector<1x32x64xbf16>
    %21 = vector.shape_cast %20 : vector<1x32x64xbf16> to vector<32x64xbf16>
    %c0_25 = arith.constant 0 : index
    %c0_26 = arith.constant 0 : index
    %c0_27 = arith.constant 0 : index
    %22 = vector.load %arg10[%c0_25, %c0_26, %c0_27] : memref<1x1x64xf32, #tpu.memory_space<vmem>>, vector<1x1x64xf32>
    %23 = vector.shape_cast %22 : vector<1x1x64xf32> to vector<1x64xf32>
    %c0_28 = arith.constant 0 : index
    %c0_29 = arith.constant 0 : index
    %c0_30 = arith.constant 0 : index
    %24 = vector.load %arg11[%c0_28, %c0_29, %c0_30] : memref<1x64x32xbf16, #tpu.memory_space<vmem>>, vector<1x64x32xbf16>
    %25 = vector.shape_cast %24 : vector<1x64x32xbf16> to vector<64x32xbf16>
    %c0_31 = arith.constant 0 : index
    %c0_32 = arith.constant 0 : index
    %c0_33 = arith.constant 0 : index
    %26 = vector.load %arg12[%c0_31, %c0_32, %c0_33] : memref<1x1x32xf32, #tpu.memory_space<vmem>>, vector<1x1x32xf32>
    %27 = vector.shape_cast %26 : vector<1x1x32xf32> to vector<1x32xf32>
    %28 = vector.shape_cast %3 : vector<2x8x32xf32> to vector<16x32xf32>
    %29 = arith.truncf %28 : vector<16x32xf32> to vector<16x32xbf16>
    %cst = arith.constant dense<0.000000e+00> : vector<16x96xf32>
    %30 = tpu.matmul %29, %13, %cst {dimension_numbers = #tpu.dot_dimension_numbers<[1], [0], [0], [1], [0, 0, 1, 1], [], []>} : vector<16x32xbf16>, vector<32x96xbf16>, vector<16x96xf32> -> vector<16x96xf32>
    %31 = vector.broadcast %15 : vector<1x96xf32> to vector<16x96xf32>
    %32 = arith.addf %30, %31 : vector<16x96xf32>
    %33 = vector.extract_strided_slice %32 {offsets = [0, 0], sizes = [16, 32], strides = [1, 1]} : vector<16x96xf32> to vector<16x32xf32>
    %34 = vector.shape_cast %33 : vector<16x32xf32> to vector<2x8x32xf32>
    %35 = vector.extract_strided_slice %32 {offsets = [0, 32], sizes = [16, 32], strides = [1, 1]} : vector<16x96xf32> to vector<16x32xf32>
    %36 = vector.shape_cast %35 : vector<16x32xf32> to vector<2x8x32xf32>
    %37 = vector.extract_strided_slice %32 {offsets = [0, 64], sizes = [16, 32], strides = [1, 1]} : vector<16x96xf32> to vector<16x32xf32>
    %38 = vector.shape_cast %37 : vector<16x32xf32> to vector<2x8x32xf32>
    %39 = arith.truncf %34 : vector<2x8x32xf32> to vector<2x8x32xbf16>
    %40 = arith.truncf %36 : vector<2x8x32xf32> to vector<2x8x32xbf16>
    "tpu.trace_start"() <{level = 10 : i32, message = "bqd,bkd->bqk"}> : () -> ()
    %cst_34 = arith.constant dense<0.000000e+00> : vector<2x8x8xf32>
    %41 = tpu.matmul %39, %40, %cst_34 {dimension_numbers = #tpu.dot_dimension_numbers<[2], [2], [1], [1], [0, 0, 0, 1, 1, 1], [0], [0]>} : vector<2x8x32xbf16>, vector<2x8x32xbf16>, vector<2x8x8xf32> -> vector<2x8x8xf32>
    %cst_35 = arith.constant 9.99999971E-10 : f32
    "tpu.trace_stop"() : () -> ()
    %42 = vector.shape_cast %8 : vector<1x8x8xi1> to vector<1x8x8xi1>
    %43 = vector.broadcast %42 : vector<1x8x8xi1> to vector<2x8x8xi1>
    %44 = vector.broadcast %cst_35 : f32 to vector<2x8x8xf32>
    %45 = arith.select %43, %44, %41 : vector<2x8x8xi1>, vector<2x8x8xf32>
    %cst_36 = arith.constant dense<0xFF800000> : vector<2x8xf32>
    %46 = vector.multi_reduction <maximumf>, %45, %cst_36 [2] : vector<2x8x8xf32> to vector<2x8xf32>
    %47 = vector.shape_cast %46 : vector<2x8xf32> to vector<2x8x1xf32>
    %48 = vector.broadcast %47 : vector<2x8x1xf32> to vector<2x8x8xf32>
    %49 = arith.subf %45, %48 : vector<2x8x8xf32>
    %50 = math.exp %49 : vector<2x8x8xf32>
    %cst_37 = arith.constant dense<0.000000e+00> : vector<2x8xf32>
    %51 = vector.multi_reduction <add>, %50, %cst_37 [2] : vector<2x8x8xf32> to vector<2x8xf32>
    %52 = vector.shape_cast %51 : vector<2x8xf32> to vector<2x8x1xf32>
    %53 = tpu.reciprocal %52 {approx = true} : vector<2x8x1xf32> -> vector<2x8x1xf32>
    %54 = vector.broadcast %53 : vector<2x8x1xf32> to vector<2x8x8xf32>
    %55 = arith.mulf %50, %54 : vector<2x8x8xf32>
    %56 = arith.truncf %55 : vector<2x8x8xf32> to vector<2x8x8xbf16>
    %57 = arith.truncf %38 : vector<2x8x32xf32> to vector<2x8x32xbf16>
    "tpu.trace_start"() <{level = 10 : i32, message = "bqk,bkd->bqd"}> : () -> ()
    %cst_38 = arith.constant dense<0.000000e+00> : vector<2x8x32xf32>
    %58 = tpu.matmul %56, %57, %cst_38 {dimension_numbers = #tpu.dot_dimension_numbers<[2], [1], [1], [2], [0, 0, 0, 1, 1, 2], [0], [0]>} : vector<2x8x8xbf16>, vector<2x8x32xbf16>, vector<2x8x32xf32> -> vector<2x8x32xf32>
    "tpu.trace_stop"() : () -> ()
    %59 = arith.addf %58, %3 : vector<2x8x32xf32>
    %60 = vector.shape_cast %59 : vector<2x8x32xf32> to vector<16x32xf32>
    %61 = arith.truncf %60 : vector<16x32xf32> to vector<16x32xbf16>
    %cst_39 = arith.constant dense<0.000000e+00> : vector<16x32xf32>
    %62 = tpu.matmul %61, %17, %cst_39 {dimension_numbers = #tpu.dot_dimension_numbers<[1], [0], [0], [1], [0, 0, 1, 1], [], []>} : vector<16x32xbf16>, vector<32x32xbf16>, vector<16x32xf32> -> vector<16x32xf32>
    %63 = vector.broadcast %19 : vector<1x32xf32> to vector<16x32xf32>
    %64 = arith.addf %62, %63 : vector<16x32xf32>
    %cst_40 = arith.constant dense<0.000000e+00> : vector<16xf32>
    %65 = vector.multi_reduction <add>, %64, %cst_40 [1] : vector<16x32xf32> to vector<16xf32>
    %66 = vector.shape_cast %65 : vector<16xf32> to vector<16x1xf32>
    %cst_41 = arith.constant 3.200000e+01 : f32
    %67 = vector.broadcast %cst_41 : f32 to vector<16x1xf32>
    %68 = arith.divf %66, %67 : vector<16x1xf32>
    %69 = arith.mulf %64, %64 : vector<16x32xf32>
    %cst_42 = arith.constant dense<0.000000e+00> : vector<16xf32>
    %70 = vector.multi_reduction <add>, %69, %cst_42 [1] : vector<16x32xf32> to vector<16xf32>
    %71 = vector.shape_cast %70 : vector<16xf32> to vector<16x1xf32>
    %cst_43 = arith.constant 3.200000e+01 : f32
    %72 = vector.broadcast %cst_43 : f32 to vector<16x1xf32>
    %73 = arith.divf %71, %72 : vector<16x1xf32>
    %74 = arith.mulf %68, %68 : vector<16x1xf32>
    %75 = arith.subf %73, %74 : vector<16x1xf32>
    %76 = vector.broadcast %68 : vector<16x1xf32> to vector<16x32xf32>
    %77 = arith.subf %64, %76 : vector<16x32xf32>
    %cst_44 = arith.constant 9.99999974E-6 : f32
    %78 = vector.broadcast %cst_44 : f32 to vector<16x1xf32>
    %79 = arith.addf %75, %78 : vector<16x1xf32>
    %80 = math.rsqrt %79 : vector<16x1xf32>
    %81 = vector.broadcast %80 : vector<16x1xf32> to vector<16x32xf32>
    %82 = arith.mulf %77, %81 : vector<16x32xf32>
    %83 = vector.shape_cast %82 : vector<16x32xf32> to vector<2x8x32xf32>
    %84 = vector.shape_cast %83 : vector<2x8x32xf32> to vector<16x32xf32>
    %85 = arith.truncf %84 : vector<16x32xf32> to vector<16x32xbf16>
    %86 = vector.extract_strided_slice %13 {offsets = [0, 0], sizes = [32, 32], strides = [1, 1]} : vector<32x96xbf16> to vector<32x32xbf16>
    %cst_45 = arith.constant dense<0.000000e+00> : vector<16x32xf32>
    %87 = tpu.matmul %85, %86, %cst_45 {dimension_numbers = #tpu.dot_dimension_numbers<[1], [0], [0], [1], [0, 0, 1, 1], [], []>} : vector<16x32xbf16>, vector<32x32xbf16>, vector<16x32xf32> -> vector<16x32xf32>
    %88 = vector.extract_strided_slice %15 {offsets = [0, 0], sizes = [1, 32], strides = [1, 1]} : vector<1x96xf32> to vector<1x32xf32>
    %89 = vector.broadcast %88 : vector<1x32xf32> to vector<16x32xf32>
    %90 = arith.addf %87, %89 : vector<16x32xf32>
    %91 = vector.shape_cast %4 : vector<2x8x32xf32> to vector<16x32xf32>
    %92 = arith.truncf %91 : vector<16x32xf32> to vector<16x32xbf16>
    %93 = vector.extract_strided_slice %13 {offsets = [0, 32], sizes = [32, 64], strides = [1, 1]} : vector<32x96xbf16> to vector<32x64xbf16>
    %cst_46 = arith.constant dense<0.000000e+00> : vector<16x64xf32>
    %94 = tpu.matmul %92, %93, %cst_46 {dimension_numbers = #tpu.dot_dimension_numbers<[1], [0], [0], [1], [0, 0, 1, 1], [], []>} : vector<16x32xbf16>, vector<32x64xbf16>, vector<16x64xf32> -> vector<16x64xf32>
    %95 = vector.extract_strided_slice %15 {offsets = [0, 32], sizes = [1, 64], strides = [1, 1]} : vector<1x96xf32> to vector<1x64xf32>
    %96 = vector.broadcast %95 : vector<1x64xf32> to vector<16x64xf32>
    %97 = arith.addf %94, %96 : vector<16x64xf32>
    %98 = vector.extract_strided_slice %97 {offsets = [0, 0], sizes = [16, 32], strides = [1, 1]} : vector<16x64xf32> to vector<16x32xf32>
    %99 = vector.shape_cast %98 : vector<16x32xf32> to vector<2x8x32xf32>
    %100 = vector.extract_strided_slice %97 {offsets = [0, 32], sizes = [16, 32], strides = [1, 1]} : vector<16x64xf32> to vector<16x32xf32>
    %101 = vector.shape_cast %100 : vector<16x32xf32> to vector<2x8x32xf32>
    %102 = vector.shape_cast %90 : vector<16x32xf32> to vector<2x8x32xf32>
    %103 = arith.truncf %102 : vector<2x8x32xf32> to vector<2x8x32xbf16>
    %104 = arith.truncf %99 : vector<2x8x32xf32> to vector<2x8x32xbf16>
    "tpu.trace_start"() <{level = 10 : i32, message = "bqd,bkd->bqk"}> : () -> ()
    %cst_47 = arith.constant dense<0.000000e+00> : vector<2x8x8xf32>
    %105 = tpu.matmul %103, %104, %cst_47 {dimension_numbers = #tpu.dot_dimension_numbers<[2], [2], [1], [1], [0, 0, 0, 1, 1, 1], [0], [0]>} : vector<2x8x32xbf16>, vector<2x8x32xbf16>, vector<2x8x8xf32> -> vector<2x8x8xf32>
    %cst_48 = arith.constant 9.99999971E-10 : f32
    "tpu.trace_stop"() : () -> ()
    %106 = vector.shape_cast %11 : vector<2x1x8xi1> to vector<2x1x8xi1>
    %107 = vector.broadcast %106 : vector<2x1x8xi1> to vector<2x8x8xi1>
    %108 = vector.broadcast %cst_48 : f32 to vector<2x8x8xf32>
    %109 = arith.select %107, %108, %105 : vector<2x8x8xi1>, vector<2x8x8xf32>
    %cst_49 = arith.constant dense<0xFF800000> : vector<2x8xf32>
    %110 = vector.multi_reduction <maximumf>, %109, %cst_49 [2] : vector<2x8x8xf32> to vector<2x8xf32>
    %111 = vector.shape_cast %110 : vector<2x8xf32> to vector<2x8x1xf32>
    %112 = vector.broadcast %111 : vector<2x8x1xf32> to vector<2x8x8xf32>
    %113 = arith.subf %109, %112 : vector<2x8x8xf32>
    %114 = math.exp %113 : vector<2x8x8xf32>
    %cst_50 = arith.constant dense<0.000000e+00> : vector<2x8xf32>
    %115 = vector.multi_reduction <add>, %114, %cst_50 [2] : vector<2x8x8xf32> to vector<2x8xf32>
    %116 = vector.shape_cast %115 : vector<2x8xf32> to vector<2x8x1xf32>
    %117 = tpu.reciprocal %116 {approx = true} : vector<2x8x1xf32> -> vector<2x8x1xf32>
    %118 = vector.broadcast %117 : vector<2x8x1xf32> to vector<2x8x8xf32>
    %119 = arith.mulf %114, %118 : vector<2x8x8xf32>
    %120 = arith.truncf %119 : vector<2x8x8xf32> to vector<2x8x8xbf16>
    %121 = arith.truncf %101 : vector<2x8x32xf32> to vector<2x8x32xbf16>
    "tpu.trace_start"() <{level = 10 : i32, message = "bqk,bkd->bqd"}> : () -> ()
    %cst_51 = arith.constant dense<0.000000e+00> : vector<2x8x32xf32>
    %122 = tpu.matmul %120, %121, %cst_51 {dimension_numbers = #tpu.dot_dimension_numbers<[2], [1], [1], [2], [0, 0, 0, 1, 1, 2], [0], [0]>} : vector<2x8x8xbf16>, vector<2x8x32xbf16>, vector<2x8x32xf32> -> vector<2x8x32xf32>
    "tpu.trace_stop"() : () -> ()
    %123 = arith.addf %122, %83 : vector<2x8x32xf32>
    %124 = vector.shape_cast %123 : vector<2x8x32xf32> to vector<16x32xf32>
    %125 = arith.truncf %124 : vector<16x32xf32> to vector<16x32xbf16>
    %cst_52 = arith.constant dense<0.000000e+00> : vector<16x32xf32>
    %126 = tpu.matmul %125, %17, %cst_52 {dimension_numbers = #tpu.dot_dimension_numbers<[1], [0], [0], [1], [0, 0, 1, 1], [], []>} : vector<16x32xbf16>, vector<32x32xbf16>, vector<16x32xf32> -> vector<16x32xf32>
    %127 = vector.broadcast %19 : vector<1x32xf32> to vector<16x32xf32>
    %128 = arith.addf %126, %127 : vector<16x32xf32>
    %cst_53 = arith.constant dense<0.000000e+00> : vector<16xf32>
    %129 = vector.multi_reduction <add>, %128, %cst_53 [1] : vector<16x32xf32> to vector<16xf32>
    %130 = vector.shape_cast %129 : vector<16xf32> to vector<16x1xf32>
    %cst_54 = arith.constant 3.200000e+01 : f32
    %131 = vector.broadcast %cst_54 : f32 to vector<16x1xf32>
    %132 = arith.divf %130, %131 : vector<16x1xf32>
    %133 = arith.mulf %128, %128 : vector<16x32xf32>
    %cst_55 = arith.constant dense<0.000000e+00> : vector<16xf32>
    %134 = vector.multi_reduction <add>, %133, %cst_55 [1] : vector<16x32xf32> to vector<16xf32>
    %135 = vector.shape_cast %134 : vector<16xf32> to vector<16x1xf32>
    %cst_56 = arith.constant 3.200000e+01 : f32
    %136 = vector.broadcast %cst_56 : f32 to vector<16x1xf32>
    %137 = arith.divf %135, %136 : vector<16x1xf32>
    %138 = arith.mulf %132, %132 : vector<16x1xf32>
    %139 = arith.subf %137, %138 : vector<16x1xf32>
    %140 = vector.broadcast %132 : vector<16x1xf32> to vector<16x32xf32>
    %141 = arith.subf %128, %140 : vector<16x32xf32>
    %cst_57 = arith.constant 9.99999974E-6 : f32
    %142 = vector.broadcast %cst_57 : f32 to vector<16x1xf32>
    %143 = arith.addf %139, %142 : vector<16x1xf32>
    %144 = math.rsqrt %143 : vector<16x1xf32>
    %145 = vector.broadcast %144 : vector<16x1xf32> to vector<16x32xf32>
    %146 = arith.mulf %141, %145 : vector<16x32xf32>
    %147 = vector.shape_cast %146 : vector<16x32xf32> to vector<2x8x32xf32>
    %148 = vector.shape_cast %147 : vector<2x8x32xf32> to vector<16x32xf32>
    %149 = arith.truncf %148 : vector<16x32xf32> to vector<16x32xbf16>
    %cst_58 = arith.constant dense<0.000000e+00> : vector<16x64xf32>
    %150 = tpu.matmul %149, %21, %cst_58 {dimension_numbers = #tpu.dot_dimension_numbers<[1], [0], [0], [1], [0, 0, 1, 1], [], []>} : vector<16x32xbf16>, vector<32x64xbf16>, vector<16x64xf32> -> vector<16x64xf32>
    %151 = vector.broadcast %23 : vector<1x64xf32> to vector<16x64xf32>
    %152 = arith.addf %150, %151 : vector<16x64xf32>
    %cst_59 = arith.constant 0.000000e+00 : f32
    %153 = vector.broadcast %cst_59 : f32 to vector<16x64xf32>
    %154 = arith.maximumf %152, %153 : vector<16x64xf32>
    %155 = arith.truncf %154 : vector<16x64xf32> to vector<16x64xbf16>
    %cst_60 = arith.constant dense<0.000000e+00> : vector<16x32xf32>
    %156 = tpu.matmul %155, %25, %cst_60 {dimension_numbers = #tpu.dot_dimension_numbers<[1], [0], [0], [1], [0, 0, 1, 1], [], []>} : vector<16x64xbf16>, vector<64x32xbf16>, vector<16x32xf32> -> vector<16x32xf32>
    %157 = vector.broadcast %27 : vector<1x32xf32> to vector<16x32xf32>
    %158 = arith.addf %156, %157 : vector<16x32xf32>
    %159 = arith.addf %158, %148 : vector<16x32xf32>
    %cst_61 = arith.constant dense<0.000000e+00> : vector<16xf32>
    %160 = vector.multi_reduction <add>, %159, %cst_61 [1] : vector<16x32xf32> to vector<16xf32>
    %161 = vector.shape_cast %160 : vector<16xf32> to vector<16x1xf32>
    %cst_62 = arith.constant 3.200000e+01 : f32
    %162 = vector.broadcast %cst_62 : f32 to vector<16x1xf32>
    %163 = arith.divf %161, %162 : vector<16x1xf32>
    %164 = arith.mulf %159, %159 : vector<16x32xf32>
    %cst_63 = arith.constant dense<0.000000e+00> : vector<16xf32>
    %165 = vector.multi_reduction <add>, %164, %cst_63 [1] : vector<16x32xf32> to vector<16xf32>
    %166 = vector.shape_cast %165 : vector<16xf32> to vector<16x1xf32>
    %cst_64 = arith.constant 3.200000e+01 : f32
    %167 = vector.broadcast %cst_64 : f32 to vector<16x1xf32>
    %168 = arith.divf %166, %167 : vector<16x1xf32>
    %169 = arith.mulf %163, %163 : vector<16x1xf32>
    %170 = arith.subf %168, %169 : vector<16x1xf32>
    %171 = vector.broadcast %163 : vector<16x1xf32> to vector<16x32xf32>
    %172 = arith.subf %159, %171 : vector<16x32xf32>
    %cst_65 = arith.constant 9.99999974E-6 : f32
    %173 = vector.broadcast %cst_65 : f32 to vector<16x1xf32>
    %174 = arith.addf %170, %173 : vector<16x1xf32>
    %175 = math.rsqrt %174 : vector<16x1xf32>
    %176 = vector.broadcast %175 : vector<16x1xf32> to vector<16x32xf32>
    %177 = arith.mulf %172, %176 : vector<16x32xf32>
    %178 = vector.shape_cast %177 : vector<16x32xf32> to vector<2x8x32xf32>
    %c0_66 = arith.constant 0 : index
    %c0_67 = arith.constant 0 : index
    %c0_68 = arith.constant 0 : index
    %179 = vector.load %arg13[%c0_66, %c0_67, %c0_68] : memref<2x8x32xf32, #tpu.memory_space<vmem>>, vector<2x8x32xf32>
    tpu.vector_store %arg13[%c0_66, %c0_67, %c0_68], %178 {strides = array<i32>} : memref<2x8x32xf32, #tpu.memory_space<vmem>>, vector<2x8x32xf32>,
    %180 = arith.truncf %55 : vector<2x8x8xf32> to vector<2x8x8xbf16>
    %c0_69 = arith.constant 0 : index
    %c0_70 = arith.constant 0 : index
    %c0_71 = arith.constant 0 : index
    %c0_72 = arith.constant 0 : index
    %181 = vector.load %arg14[%c0_69, %c0_70, %c0_71, %c0_72] : memref<1x2x8x8xbf16, #tpu.memory_space<vmem>>, vector<1x2x8x8xbf16>
    %182 = vector.shape_cast %181 : vector<1x2x8x8xbf16> to vector<2x8x8xbf16>
    %183 = vector.shape_cast %180 : vector<2x8x8xbf16> to vector<1x2x8x8xbf16>
    tpu.vector_store %arg14[%c0_69, %c0_70, %c0_71, %c0_72], %183 {strides = array<i32>} : memref<1x2x8x8xbf16, #tpu.memory_space<vmem>>, vector<1x2x8x8xbf16>,
    %184 = arith.truncf %119 : vector<2x8x8xf32> to vector<2x8x8xbf16>
    %c0_73 = arith.constant 0 : index
    %c0_74 = arith.constant 0 : index
    %c0_75 = arith.constant 0 : index
    %c0_76 = arith.constant 0 : index
    %185 = vector.load %arg15[%c0_73, %c0_74, %c0_75, %c0_76] : memref<1x2x8x8xbf16, #tpu.memory_space<vmem>>, vector<1x2x8x8xbf16>
    %186 = vector.shape_cast %185 : vector<1x2x8x8xbf16> to vector<2x8x8xbf16>
    %187 = vector.shape_cast %184 : vector<2x8x8xbf16> to vector<1x2x8x8xbf16>
    tpu.vector_store %arg15[%c0_73, %c0_74, %c0_75, %c0_76], %187 {strides = array<i32>} : memref<1x2x8x8xbf16, #tpu.memory_space<vmem>>, vector<1x2x8x8xbf16>,
    return
  }
  func.func @transform_0(%arg0: i32, %arg1: i32) -> (i32, i32, i32) {
    %c0_i32 = arith.constant 0 : i32
    %c0_i32_0 = arith.constant 0 : i32
    %c0_i32_1 = arith.constant 0 : i32
    return %arg0, %c0_i32, %c0_i32_0 : i32, i32, i32
  }
  func.func @transform_1(%arg0: i32, %arg1: i32) -> (i32, i32, i32) {
    %c0_i32 = arith.constant 0 : i32
    %c0_i32_0 = arith.constant 0 : i32
    %c0_i32_1 = arith.constant 0 : i32
    return %arg0, %c0_i32, %c0_i32_0 : i32, i32, i32
  }
  func.func @transform_2(%arg0: i32, %arg1: i32) -> (i32, i32, i32) {
    %c0_i32 = arith.constant 0 : i32
    %c0_i32_0 = arith.constant 0 : i32
    %c0_i32_1 = arith.constant 0 : i32
    return %arg0, %c0_i32, %c0_i32_0 : i32, i32, i32
  }
  func.func @transform_3(%arg0: i32, %arg1: i32) -> (i32, i32, i32) {
    %c0_i32 = arith.constant 0 : i32
    %c0_i32_0 = arith.constant 0 : i32
    %c0_i32_1 = arith.constant 0 : i32
    return %arg1, %c0_i32, %c0_i32_0 : i32, i32, i32
  }
  func.func @transform_4(%arg0: i32, %arg1: i32) -> (i32, i32, i32) {
    %c0_i32 = arith.constant 0 : i32
    %c0_i32_0 = arith.constant 0 : i32
    %c0_i32_1 = arith.constant 0 : i32
    return %arg1, %c0_i32, %c0_i32_0 : i32, i32, i32
  }
  func.func @transform_5(%arg0: i32, %arg1: i32) -> (i32, i32, i32) {
    %c0_i32 = arith.constant 0 : i32
    %c0_i32_0 = arith.constant 0 : i32
    %c0_i32_1 = arith.constant 0 : i32
    return %arg1, %c0_i32, %c0_i32_0 : i32, i32, i32
  }
  func.func @transform_6(%arg0: i32, %arg1: i32) -> (i32, i32, i32) {
    %c0_i32 = arith.constant 0 : i32
    %c0_i32_0 = arith.constant 0 : i32
    %c0_i32_1 = arith.constant 0 : i32
    return %arg1, %c0_i32, %c0_i32_0 : i32, i32, i32
  }
  func.func @transform_7(%arg0: i32, %arg1: i32) -> (i32, i32, i32) {
    %c0_i32 = arith.constant 0 : i32
    %c0_i32_0 = arith.constant 0 : i32
    %c0_i32_1 = arith.constant 0 : i32
    return %arg1, %c0_i32, %c0_i32_0 : i32, i32, i32
  }
  func.func @transform_8(%arg0: i32, %arg1: i32) -> (i32, i32, i32) {
    %c0_i32 = arith.constant 0 : i32
    %c0_i32_0 = arith.constant 0 : i32
    %c0_i32_1 = arith.constant 0 : i32
    return %arg1, %c0_i32, %c0_i32_0 : i32, i32, i32
  }
  func.func @transform_9(%arg0: i32, %arg1: i32) -> (i32, i32, i32) {
    %c0_i32 = arith.constant 0 : i32
    %c0_i32_0 = arith.constant 0 : i32
    %c0_i32_1 = arith.constant 0 : i32
    return %arg1, %c0_i32, %c0_i32_0 : i32, i32, i32
  }
  func.func @transform_10(%arg0: i32, %arg1: i32) -> (i32, i32, i32) {
    %c0_i32 = arith.constant 0 : i32
    %c0_i32_0 = arith.constant 0 : i32
    %c0_i32_1 = arith.constant 0 : i32
    return %arg1, %c0_i32, %c0_i32_0 : i32, i32, i32
  }
  func.func @transform_11(%arg0: i32, %arg1: i32) -> (i32, i32, i32) {
    %c0_i32 = arith.constant 0 : i32
    %c0_i32_0 = arith.constant 0 : i32
    %c0_i32_1 = arith.constant 0 : i32
    return %arg0, %c0_i32, %c0_i32_0 : i32, i32, i32
  }
  func.func @transform_12(%arg0: i32, %arg1: i32) -> (i32, i32, i32, i32) {
    %c0_i32 = arith.constant 0 : i32
    %c0_i32_0 = arith.constant 0 : i32
    %c0_i32_1 = arith.constant 0 : i32
    return %arg1, %arg0, %c0_i32, %c0_i32_0 : i32, i32, i32, i32
  }
  func.func @transform_13(%arg0: i32, %arg1: i32) -> (i32, i32, i32, i32) {
    %c0_i32 = arith.constant 0 : i32
    %c0_i32_0 = arith.constant 0 : i32
    %c0_i32_1 = arith.constant 0 : i32
    return %arg1, %arg0, %c0_i32, %c0_i32_0 : i32, i32, i32, i32
  }
}

</mosaic_0001>

<bundles_post_ra>
// kernel: tpu_custom_call.1
= control target key start
LH: loop header
LB: loop body
LE: loop exit
PB: predicated region body
PF: predicated region fallthrough
CT: control target
= control target key end

     0   :  { %s3042_s0 = inlined_call_operand.hbm [shape: f32[2,8,32], index: 0, kind: input, shape index: {}]   ;;  %s3043_s1 = inlined_call_operand.hbm [shape: f32[2,8,32], index: 1, kind: input, shape index: {}]   ;;  %s3044_s2 = inlined_call_operand.vmem [shape: s32[2,1,8], index: 2, kind: input, shape index: {}]   ;;  %s3045_s3 = inlined_call_operand.vmem [shape: bf16[2,32,96], index: 3, kind: input, shape index: {}]   ;;  %s3046_s4 = inlined_call_operand.vmem [shape: f32[2,1,96], index: 4, kind: input, shape index: {}]   ;;  %s3047_s5 = inlined_call_operand.vmem [shape: bf16[2,32,32], index: 5, kind: input, shape index: {}]   ;;  %s3048_s6 = inlined_call_operand.vmem [shape: f32[2,1,32], index: 6, kind: input, shape index: {}]   ;;  %s3049_s7 = inlined_call_operand.vmem [shape: bf16[2,32,64], index: 7, kind: input, shape index: {}]   ;;  %s3050_s8 = inlined_call_operand.vmem [shape: f32[2,1,64], index: 8, kind: input, shape index: {}]   ;;  %s3051_s9 = inlined_call_operand.vmem [shape: bf16[2,64,32], index: 9, kind: input, shape index: {}]   ;;  %s3052_s10 = inlined_call_operand.vmem [shape: f32[2,1,32], index: 10, kind: input, shape index: {}]   ;;  %s3053_s11 = inlined_call_operand.hbm [shape: f32[2,8,32], index: 11, kind: output, shape index: {0}]   ;;  %s3054_s12 = inlined_call_operand.hbm [shape: bf16[2,2,8,8], index: 12, kind: output, shape index: {1}]   ;;  %s3055_s13 = inlined_call_operand.hbm [shape: bf16[2,2,8,8], index: 13, kind: output, shape index: {2}]  }
   0x1   :  { %3067 = sst [smem:[#allocation22_spill]] %s3042_s0 }
   0x2   :  { %3068 = sst [smem:[#allocation23_spill]] %s3043_s1 }
   0x3   :  { %3069 = sst [smem:[#allocation24_spill]] %s3045_s3 }
   0x4   :  { %3070 = sst [smem:[#allocation25_spill]] %s3047_s5 }
   0x5   :  { %3071 = sst [smem:[#allocation26_spill]] %s3053_s11 }
   0x6   :  { %3072 = sst [smem:[#allocation27_spill]] %s3055_s13 }
   0x7   :  { %19 = vsyncpa [#allocation3], 0 }
   0x8   :  { %20 = vsyncpa [#allocation6], 0 }
   0x9   :  { %21 = vsyncpa [#allocation4], 0 }
   0xa   :  { %22 = vsyncpa [#allocation9], 0 }
   0xb   :  { %24 = vsyncpa [#allocation9 + $0x1], 0  ;;  %s2580_s25 = smov 0   ;;  %s2582_s26 = smov 0  }
   0xc   :  { %s2584_s27 = smov 0   ;;  %s2586_s28 = smov 0  }
   0xd   :  { %s2588_s29 = smov 0   ;;  %s2590_s30 = smov 0  }
   0xe LB: > { %3073 = sst [smem:[#allocation15_spill]] %s2477_s26  ;;  %s2609_s14 = sadd.s32 4294967295, %s2493_s30   ;;  %s2493_s30 = sphi %s2590_s30, %s30_s30   ;;  %s2489_s29 = sphi %s2588_s29, %s3108_s29   ;;  %s2485_s28 = sphi %s2586_s28, %s3107_s28   ;;  %s2481_s27 = sphi %s2584_s27, %s3106_s27   ;;  %s2477_s26 = sphi %s2582_s26, %s3105_s26   ;;  %s2473_s25 = sphi %s2580_s25, %s3104_s25  }
   0xf   : > { %3074 = sst [smem:[#allocation16_spill]] %s2481_s27  ;;  %s3056_s15 = sadd.s32 4294967294, %s2493_s30  }
  0x10   : > { %3075 = sst [smem:[#allocation17_spill]] %s2489_s29  ;;  %s39_s16 = sadd.s32 1, %s2489_s29 }
  0x11   : > { %3076 = sst [smem:[#allocation18_spill]] %s2493_s30  ;;  %s363_s17 = sadd.s32 1, %s2481_s27 }
  0x12   : > { %p40_p0 = scmp.ge.s32.totalorder %s39_s16, 2  ;;  %p373_p1 = scmp.ne.s32.totalorder %s2481_s27, %s2477_s26 }
  0x13   : > { %p3059_p2 = scmp.eq.s32.totalorder %s2609_s14, 1  ;;  %p379_p3 = scmp.ne.s32.totalorder %s2477_s26, %s2473_s25 }
  0x14   : > { %s3110_s16 = smov (%p40_p0, %s39_s16), 0  ;;  %p380_p5 = scmp.eq.s32.totalorder %s3056_s15, 1 }
  0x15   : > { %3077 = sst [smem:[#allocation19_spill]] %s3110_s16  ;;  %p2622_p4 = por %p3059_p2, %p373_p1 }
  0x16   : > { %s358_s19 = ssub.s32 %s2489_s29, %s3110_s16  ;;  %p1956_p6 = scmp.ge.s32.totalorder %s2493_s30, 1 }
  0x17   : > { %p361_p7 = scmp.eq.s32.totalorder %s358_s19, 0  ;;  %p2631_p8 = por %p380_p5, %p379_p3 }
  0x18   : > { %p415_p9 = scmp.lt.s32.totalorder %s2493_s30, 3  ;;  %p3060_p11 = scmp.eq.s32.totalorder %s2609_s14, 0 }
  0x19   : > { %s3079_s20 = scalar_select %p2631_p8, 1, 0 }
  0x1a   : > { %s2637_s21 = scalar_select %p361_p7, %s2481_s27, %s363_s17  }
  0x1b   : > { %3080 = sst [smem:[#allocation20_spill]] %s3079_s20  ;;  %p2639_p10 = pnand %p1956_p6, %p415_p9 }
  0x1c   : > { %3081 = sst [smem:[#allocation21_spill]] %s2637_s21  ;;  %s2495_s23 = smov [#allocation2]  }
  0x1d   : > { %p2183_p12 = pneg %p2639_p10  ;;  %s430_s24 = sshll.u32 %s2495_s23, 4  ;;  %s431_s24 = int_to_ptr.vmem [resolvable:$true] %s430_s24 }
  0x1e   : > { %s2496_s17 = smov [#allocation5]   ;;  %s2314_s15 = scalar_lea.vmem %s431_s24, 256 }
  0x1f   : > { %p2648_p13 = pnand %p3060_p11, %p2183_p12  ;;  %s446_s19 = sshll.u32 %s2496_s17, 4  ;;  %s447_s19 = int_to_ptr.vmem [resolvable:$true] %s446_s19 }
  0x20   : > { %p2315_p1 = scmp.ne.s32.totalorder %s431_s24, %s2314_s15  ;;  %p2322_p6 = scmp.lt.s32.totalorder %s431_s24, %s431_s24 }
  0x21   : > { %p2305_p0 = pneg %p2648_p13  ;;  %p2323_p7 = scmp.lt.s32.totalorder %s2314_s15, %s2314_s15 }
  0x23   : > { %p2317_p3 = pnand %p2315_p1, %p2305_p0  ;;  %p2324_p9 = por %p2323_p7, %p2322_p6 }
  0x25   : > { %p2318_p5 = pneg %p2317_p3 }
  0x27   : > { %p2325_p12 = pnand %p2324_p9, %p2318_p5 }
  0x29   : > { %2328 = shalt.err (!%p2325_p12)
}
  0x2a   : > { %s2497_s23 = smov 128   ;;  %s2498_s16 = smov 8  }
  0x2b   : > { %s3084_s0 = sld [smem:[#allocation22_spill]]  ;;  %s2340_s21 = scalar_lea.vmem %s447_s19, 256 }
  0x2c   : > { %p2341_p2 = scmp.ne.s32.totalorder %s447_s19, %s2340_s21  ;;  %p2348_p11 = scmp.lt.s32.totalorder %s447_s19, %s447_s19 }
  0x2d   : > { %p2349_p8 = scmp.lt.s32.totalorder %s2340_s21, %s2340_s21 }
  0x2e   : > { %p2343_p1 = pnand %p2341_p2, %p2305_p0 }
  0x2f   : > { %p2350_p6 = por %p2349_p8, %p2348_p11 }
  0x30   : > { %p2344_p3 = pneg %p2343_p1 }
  0x31   : > { %2186 = dma.hbm_to_vmem [thread:$0]  (!%p2648_p13), %s3084_s0, 256, %s431_s24, [#allocation3], %s2497_s23, %s2497_s23, %s2498_s16  }
  0x32   : > { %p2351_p5 = pnand %p2350_p6, %p2344_p3 }
  0x34   : > { %2354 = shalt.err (!%p2351_p5)
}
  0x35   : > { %s3085_s1 = sld [smem:[#allocation23_spill]]  ;;  %p3086_p7 = scmp.eq.s32.totalorder (!%p2639_p10), %s2609_s14, 0 }
  0x37   : > { %526 = sbr.rel (%p2639_p10) target bundleno = 3342 (0xd0e), region = 64 }
  0x3b   : > { %2189 = dma.hbm_to_vmem [thread:$0]  (!%p2648_p13), %s3085_s1, 256, %s447_s19, [#allocation6], %s2497_s23, %s2497_s23, %s2498_s16  }
  0x3c   : > { %2456 = dma.done.wait (%p3086_p7), [#allocation3], 256   ;;  %p3087_p2 = pmov %p3086_p7 }
  0x3e   : > { %2458 = vsyncadd (%p3087_p2), [#allocation3], 4294967040  ;;  %p3088_p0 = pmov %p3087_p2 }
  0x40   : > { %2460 = dma.done.wait (%p3088_p0), [#allocation6], 256   ;;  %p3089_p8 = pmov %p3088_p0 }
  0x41   : > { %s600_s27 = sand.u32 1, %s2477_s26   ;;  %p617_p11 = scmp.lt.s32.totalorder %s2485_s28, 1 }
  0x42   : > { %2462 = vsyncadd (%p3089_p8), [#allocation6], 4294967040  ;;  %s1964_s29 = sshll.u32 %s600_s27, 3  ;;  %s3090_s3 = sld [smem:[#allocation24_spill]] }
  0x43   : > { %s2683_s16 = scalar_select %p617_p11, %s2485_s28, 1 }
  0x44   : > { %s3091_s5 = sld [smem:[#allocation25_spill]]  ;;  %s2721_s26 = scalar_lea.vmem [#allocation8], %s1964_s29 }
  0x45   : > { %s2014_s21 = sshll.u32 %s2683_s16, 4  ;;  %s640_s25 = scalar_lea.vmem %s3050_s8, %s2683_s16 }
  0x46   : > { %s2705_s13 = scalar_lea.vmem %s3049_s7, %s2014_s21  ;;  %s2017_s19 = sshll.u32 %s2683_s16, 5 }
  0x47   : > { %s2715_s0 = scalar_lea.vmem %s3051_s9, %s2017_s19  ;;  %s648_s1 = scalar_lea.vmem %s3052_s10, %s2683_s16 }
  0x48   : > { %s621_s17 = scalar_lea.vmem %s3090_s3, %s2014_s21  ;;  %s2723_s20 = scalar_lea.vmem [#allocation10], %s1964_s29 }
  0x49   : > { %p1974_p10 = scmp.ne.s32.totalorder %s2485_s28, 0 }
  0x4a   : > { %s2696_s27 = scalar_lea.vmem %s3091_s5, %s2014_s21 }
  0x4b   : > { %656 = sbr.rel (%p1974_p10) target bundleno = 82 (0x52), region = 76 }
  0x50   : > { %v657_v0 = vld [vmem:[#allocation2] sm:$0xff]  ;;  %vm659_vm0 = vcmask 261120   ;;  %v658_v1 = vld [vmem:[#allocation2 + $0x8] sm:$0xff] }
  0x51   : > { %660 = vst.msk [vmem:[#allocation7] sm:$0xff] %vm659_vm0, %v657_v0  ;;  %661 = vst.msk [vmem:[#allocation7 + $0x8] sm:$0xff] %vm659_vm0, %v658_v1 }
  0x52 PF: > { %v2726_v2 = vld [vmem:[%s621_s17 + $0x8] sm:$0xff]   ;;  %v2499_v3 = vmov 0.0   ;;  %v2731_v4 = vld [vmem:[%s621_s17] sm:$0xff]   ;;  %vm2500_vm1 = vmmov 0   ;;  %vm718_vm2 = vcmask 261120   ;;  %s3092_s11 = scalar_lea.vmem %s3046_s4, %s2683_s16  ;;  %s2501_s30 = smov 96   ;;  %v666_v21 = vlaneseq }
  0x53   : > { %2059 = vmatprep.subr.bf16.mxu1 %v2499_v3  ;;  %2073 = vmatprep.subr.bf16.mxu0 %v2499_v3  ;;  %v2754_v8 = vld [vmem:[%s3092_s11] ss:$0 sm:$0xff]  ;;  %vm867_vm4 = vcmask 64512   ;;  %s2502_s29 = smov 64   ;;  %vm897_vm5 = vcmask 1043456   ;;  %vm1664_vm6 = vcmask 60416  }
  0x54   : > { %2060 = vmatpush3.bf16.msra.mxu1 %v2726_v2  ;;  %2063 = vmatprep.mubr.msk.bf16.mxu1 %vm2500_vm1, %v2499_v3  ;;  %v2770_v22 = vshrl.u32 %v666_v21, 7  ;;  %v669_v23 = vand.u32 127, %v666_v21  ;;  %v2798_v58 = vld [vmem:[%s2696_s27 + $0x8] sm:$0xff]   ;;  %v2803_v59 = vld [vmem:[%s2696_s27] sm:$0xff]   ;;  %s3093_s27 = scalar_lea.vmem %s3048_s6, %s2683_s16  ;;  %vm1585_vm11 = vcmask 523264   ;;  %s1669_s16 = sand.u32 1, %s2609_s14  }
  0x55   : > { %2061 = vmatprep.subr.bf16.mxu1 %v2499_v3  ;;  %2075 = vmatprep.mubr.msk.bf16.mxu0 %vm2500_vm1, %v2499_v3  ;;  %s2950_s21 = scalar_lea.sflag [#allocation9], %s1669_s16 }
  0x56   : > { %vm670_vm3 = vcmp.gt.s32.totalorder %v669_v23, %v2770_v22 }
  0x58   : > { %v2735_v5 = vld [vmem:[#allocation7] sm:$0xff]  ;;  %v2737_v6 = vld [vmem:[#allocation7 + $0x8] sm:$0xff]  ;;  %2062 = vmatpush3.bf16.msra.mxu1 %v2731_v4 }
  0x59   : > { %v699_v7 = vpack.c.bf16 %v2737_v6, %v2735_v5  ;;  %2067 = vmatprep.subr.bf16.mxu1 %v2499_v3 }
  0x5b   : > { %2064 = vmatmul.mubr.msk.bf16.vlgmr.msra.gmra.mxu1 %vm718_vm2, %v699_v7 }
  0x5c   : > { %2069 = vmatprep.mubr.msk.bf16.mxu1 %vm2500_vm1, %v2499_v3 }
 0x11b   : > { %v756_v9 = vpop.f32.mrf.mxu1 }
 0x11c   : > { %v757_v10 = vadd.f32 %v2754_v8, %v756_v9 }
 0x11d   : > { %v2065_v11 = vpop.f32.mrf.mxu1 }
 0x11e   : > { %v763_v12 = vpack.c.bf16 %v757_v10, %v757_v10 }
 0x11f   : > { %v759_v13 = vpop.f32.mrf.mxu1 }
 0x120   : > { %v760_v14 = vadd.f32 %v2754_v8, %v759_v13  ;;  %766 = vrot.lane.b32.xlu0 %v763_v12, %s2501_s30  ;;  %v2817_v13 = vld [vmem:[%s3093_s27] ss:$0 sm:$0xff]  ;;  %s2504_s27 = smov [#allocation8]  }
 0x121   : > { %v2066_v15 = vpop.f32.mrf.mxu1  ;;  %s2359_s22 = sshll.u32 %s2504_s27, 4  ;;  %s2360_s22 = int_to_ptr.vmem [resolvable:$false] %s2359_s22 }
 0x122   : > { %v764_v16 = vpack.c.bf16 %v760_v14, %v760_v14  ;;  %s2361_s24 = scalar_lea.vmem %s2360_s22, 256 }
 0x124   : > { %815 = vrot.lane.b32.xlu0 %v764_v16, %s2501_s30 }
 0x192   : > { %v767_v17 = vpop.permute.xlu0 %766 }
 0x193   : > { %v772_v18 = vsel %vm718_vm2, %v767_v17, 0 }
 0x194   : > { %2068 = vmatpush3.bf16.xpose.msra.mxu1 %v772_v18 }
 0x195   : > { %2079 = vmatprep.subr.bf16.mxu1 %v2499_v3 }
 0x196   : > { %v816_v19 = vpop.permute.xlu0 %815 }
 0x197   : > { %v821_v20 = vsel %vm718_vm2, %v816_v19, 0 }
 0x198   : > { %2074 = vmatpush3.bf16.xpose.msra.mxu0 %v821_v20 }
 0x199   : > { %2085 = vmatprep.subr.bf16.mxu0 %v2499_v3 }
 0x19b   : > { %2070 = vmatmul.mubr.msk.bf16.vlgmr.msra.gmra.mxu1 %vm718_vm2, %v763_v12 }
 0x19c   : > { %2081 = vmatprep.mubr.msk.bf16.mxu1 %vm2500_vm1, %v2499_v3 }
 0x19f   : > { %2076 = vmatmul.mubr.msk.bf16.vlgmr.msra.gmra.mxu0 %vm718_vm2, %v764_v16 }
 0x1a0   : > { %2087 = vmatprep.mubr.msk.bf16.mxu0 %vm2500_vm1, %v2499_v3 }
 0x25b   : > { %v808_v24 = vpop.f32.mrf.mxu1 }
 0x25c   : > { %v865_v25 = vsel %vm670_vm3, 1e-09, %v808_v24 }
 0x25d   : > { %v2071_v26 = vpop.f32.mrf.mxu1  ;;  %v868_v27 = vsel %vm867_vm4, %v865_v25, -inf }
 0x25e   : > { %869 = vmax.xlane.f32.xlu1 %v868_v27 }
 0x25f   : > { %v811_v28 = vpop.f32.mrf.mxu1  ;;  %v857_v29 = vpop.f32.mrf.mxu0 }
 0x260   : > { %v866_v30 = vsel %vm670_vm3, 1e-09, %v857_v29 }
 0x261   : > { %v2072_v31 = vpop.f32.mrf.mxu1  ;;  %v2077_v32 = vpop.f32.mrf.mxu0  ;;  %v871_v33 = vsel %vm867_vm4, %v866_v30, -inf }
 0x262   : > { %872 = vmax.xlane.f32.xlu1 %v871_v33 }
 0x263   : > { %v860_v34 = vpop.f32.mrf.mxu0 }
 0x265   : > { %v2078_v35 = vpop.f32.mrf.mxu0 }
 0x273   : > { %892 = vrot.lane.b32.xlu1 %v763_v12, %s2502_s29 }
 0x2e7   : > { %v870_v36 = vpop.xlane.xlu1 %869 }
 0x2e8   : > { %v874_v37 = vsub.f32 %v865_v25, %v870_v36 }
 0x2ea   : > { %v876_v38 = vmul.f32 1.442695, %v874_v37 }
 0x2eb   : > { %v873_v39 = vpop.xlane.xlu1 %872 }
 0x2ec   : > { %2275 = vpow2.f32 %v876_v38  ;;  %v875_v40 = vsub.f32 %v866_v30, %v873_v39  ;;  %v665_v39 = vld [vmem:[#allocation5 + $0x8] sm:$0xff] }
 0x2ee   : > { %v878_v41 = vmul.f32 1.442695, %v875_v40 }
 0x2ef   : > { %v893_v42 = vpop.permute.xlu1 %892 }
 0x2f0   : > { %2277 = vpow2.f32 %v878_v41  ;;  %v899_v43 = vsel %vm897_vm5, %v893_v42, 0 }
 0x2f1   : > { %2080 = vmatpush3.bf16.msra.mxu1 %v899_v43 }
 0x2f2   : > { %2091 = vmatprep.subr.bf16.mxu1 %v2499_v3 }
 0x2f9   : > { %v2276_v44 = vpop.eup %2275 }
 0x2fa   : > { %v880_v45 = vsel %vm867_vm4, %v2276_v44, 0.0 }
 0x2fb   : > { %881 = vadd.xlane.f32.xlu0 %v880_v45 }
 0x2fd   : > { %v2278_v46 = vpop.eup %2277 }
 0x2fe   : > { %v883_v47 = vsel %vm867_vm4, %v2278_v46, 0.0 }
 0x2ff   : > { %884 = vadd.xlane.f32.xlu1 %v883_v47 }
 0x310   : > { %941 = vrot.lane.b32.xlu1 %v764_v16, %s2502_s29 }
 0x384   : > { %v882_v48 = vpop.xlane.xlu0 %881 }
 0x385   : > { %2279 = vrcp.f32 %v882_v48 }
 0x388   : > { %v885_v49 = vpop.xlane.xlu1 %884 }
 0x389   : > { %2281 = vrcp.f32 %v885_v49 }
 0x38c   : > { %v942_v50 = vpop.permute.xlu1 %941 }
 0x38d   : > { %v947_v51 = vsel %vm897_vm5, %v942_v50, 0 }
 0x38e   : > { %2086 = vmatpush3.bf16.msra.mxu0 %v947_v51 }
 0x38f   : > { %2099 = vmatprep.subr.bf16.mxu0 %v2499_v3 }
 0x392   : > { %v2280_v52 = vpop.eup %2279 }
 0x393   : > { %v888_v53 = vmul.f32 %v2280_v52, %v2276_v44 }
 0x395   : > { %v890_v54 = vpack.c.bf16 %v888_v53, %v888_v53 }
 0x396   : > { %v2282_v55 = vpop.eup %2281 }
 0x397   : > { %2082 = vmatmul.mubr.msk.bf16.vlgmr.msra.gmra.mxu1 %vm867_vm4, %v890_v54  ;;  %v889_v56 = vmul.f32 %v2282_v55, %v2278_v46  ;;  %1665 = vst.msk [vmem:[%s2721_s26] sm:$0xf] %vm1664_vm6, %v890_v54 }
 0x398   : > { %2095 = vmatprep.mubr.msk.bf16.mxu1 %vm2500_vm1, %v2499_v3  ;;  %2092 = vmatpush3.bf16.msra.mxu1 %v2798_v58 }
 0x399   : > { %v891_v57 = vpack.c.bf16 %v889_v56, %v889_v56  ;;  %2093 = vmatprep.subr.bf16.mxu1 %v2499_v3 }
 0x39b   : > { %2088 = vmatmul.mubr.msk.bf16.vlgmr.msra.gmra.mxu0 %vm867_vm4, %v891_v57  ;;  %1666 = vst.msk [vmem:[%s2721_s26 + $0x4] sm:$0xf] %vm1664_vm6, %v891_v57 }
 0x39c   : > { %2100 = vmatpush3.bf16.msra.mxu0 %v2726_v2  ;;  %2103 = vmatprep.mubr.msk.bf16.mxu0 %vm2500_vm1, %v2499_v3 }
 0x39d   : > { %2101 = vmatprep.subr.bf16.mxu0 %v2499_v3  ;;  %2094 = vmatpush3.bf16.msra.mxu1 %v2803_v59 }
 0x39e   : > { %2107 = vmatprep.subr.bf16.mxu1 %v2499_v3 }
 0x3a0   : > { %2102 = vmatpush3.bf16.msra.mxu0 %v2731_v4 }
 0x3a1   : > { %2115 = vmatprep.subr.bf16.mxu0 %v2499_v3 }
 0x457   : > { %v935_v60 = vpop.f32.mrf.mxu1 }
 0x458   : > { %v936_v0 = vadd.f32 %v935_v60, %v2735_v5 }
 0x459   : > { %v2083_v61 = vpop.f32.mrf.mxu1 }
 0x45b   : > { %v938_v62 = vpop.f32.mrf.mxu1  ;;  %v983_v63 = vpop.f32.mrf.mxu0 }
 0x45c   : > { %v984_v1 = vadd.f32 %v983_v63, %v2737_v6 }
 0x45d   : > { %v2084_v7 = vpop.f32.mrf.mxu1  ;;  %v2089_v9 = vpop.f32.mrf.mxu0 }
 0x45e   : > { %v989_v10 = vpack.c.bf16 %v984_v1, %v936_v0 }
 0x45f   : > { %v986_v11 = vpop.f32.mrf.mxu0 }
 0x460   : > { %2096 = vmatmul.mubr.msk.bf16.vlgmr.msra.gmra.mxu1 %vm718_vm2, %v989_v10 }
 0x461   : > { %v2090_v12 = vpop.f32.mrf.mxu0  ;;  %2111 = vmatprep.mubr.msk.bf16.mxu1 %vm2500_vm1, %v2499_v3 }
 0x462   : > { %v671_v12 = vld [vmem:[%s3044_s2] sm:$0x1] }
 0x463   : > { %vm673_vm7 = vcmp.eq.s32.totalorder %v671_v12, 0 }
 0x520   : > { %v1045_v14 = vpop.f32.mrf.mxu1 }
 0x521   : > { %v1046_v5 = vadd.f32 %v2817_v13, %v1045_v14  ;;  %v1282_v14 = vsub.s32 0, %v2770_v22 }
 0x522   : > { %v2097_v6 = vpop.f32.mrf.mxu1 }
 0x523   : > { %v1052_v15 = vsel %vm718_vm2, %v1046_v5, 0.0  ;;  %v1061_v16 = vmul.f32 %v1046_v5, %v1046_v5 }
 0x524   : > { %1053 = vadd.xlane.f32.xlu1 %v1052_v15  ;;  %v1048_v17 = vpop.f32.mrf.mxu1 }
 0x525   : > { %v1049_v18 = vadd.f32 %v2817_v13, %v1048_v17  ;;  %v1063_v19 = vsel %vm718_vm2, %v1061_v16, 0.0 }
 0x526   : > { %1064 = vadd.xlane.f32.xlu0 %v1063_v19  ;;  %v2098_v20 = vpop.f32.mrf.mxu1 }
 0x527   : > { %v1055_v21 = vsel %vm718_vm2, %v1049_v18, 0.0  ;;  %v1062_v23 = vmul.f32 %v1049_v18, %v1049_v18 }
 0x529   : > { %v1066_v24 = vsel %vm718_vm2, %v1062_v23, 0.0 }
 0x52a   : > { %1056 = vadd.xlane.f32.xlu0 %v1055_v21 }
 0x52e   : > { %1067 = vadd.xlane.f32.xlu0 %v1066_v24 }
 0x535   : > { %1129 = vrot.lane.b32.xlu1 %v2731_v4, %s2501_s30 }
 0x544   : > { %1131 = vrot.lane.b32.xlu0 %v2726_v2, %s2501_s30  ;;  %v664_v2 = vld [vmem:[#allocation5] sm:$0xff] }
 0x545   : > { %v1128_v41 = vpack.c.bf16 %v665_v39, %v664_v2 }
 0x548   : > { %1135 = vrot.lane.b32.xlu0 %v2754_v8, %s2501_s30 }
 0x5ad   : > { %v1054_v25 = vpop.xlane.xlu1 %1053 }
 0x5ae   : > { %v1059_v26 = vmul.f32 0.03125, %v1054_v25 }
 0x5af   : > { %v1065_v27 = vpop.xlane.xlu0 %1064 }
 0x5b0   : > { %v1071_v28 = vmul.f32 %v1059_v26, %v1059_v26  ;;  %v1069_v29 = vmul.f32 0.03125, %v1065_v27  ;;  %v1075_v43 = vsub.f32 %v1046_v5, %v1059_v26  ;;  %v2503_v5 = vmov 0  }
 0x5b1   : > { %v1130_v40 = vpop.permute.xlu1 %1129  ;;  %v1278_v6 = vsel %vm673_vm7, 1, %v2503_v5 }
 0x5b2   : > { %v1073_v31 = vsub.f32 %v1069_v29, %v1071_v28  ;;  %v1283_v15 = vrot.slane %v1278_v6, %v1282_v14  ;;  %v2270_v6 = vld [vmem:[%s2705_s13] sm:$0xff]  }
 0x5b3   : > { %v1057_v30 = vpop.xlane.xlu0 %1056 }
 0x5b4   : > { %v1060_v32 = vmul.f32 0.03125, %v1057_v30  ;;  %v1077_v34 = vadd.f32 1e-05, %v1073_v31  ;;  %vm1288_vm9 = vcmp.eq.s32.totalorder %v1283_v15, 1  ;;  %v2271_v15 = vld [vmem:[%s2715_s0 + $0x18] sm:$0xff]  }
 0x5b6   : > { %v1072_v35 = vmul.f32 %v1060_v32, %v1060_v32  ;;  %2283 = vrsqrt.f32 %v1077_v34  ;;  %v1076_v44 = vsub.f32 %v1049_v18, %v1060_v32 }
 0x5b7   : > { %v1068_v33 = vpop.xlane.xlu0 %1067 }
 0x5b8   : > { %v1070_v36 = vmul.f32 0.03125, %v1068_v33 }
 0x5ba   : > { %v1074_v37 = vsub.f32 %v1070_v36, %v1072_v35 }
 0x5bb   : > { %v1132_v4 = vpop.permute.xlu0 %1131 }
 0x5bc   : > { %v1078_v38 = vadd.f32 1e-05, %v1074_v37  ;;  %2108 = vmatpush3.bf16.msra.mxu1 %v1132_v4 }
 0x5bd   : > { %2109 = vmatprep.subr.bf16.mxu1 %v2499_v3 }
 0x5be   : > { %2285 = vrsqrt.f32 %v1078_v38 }
 0x5bf   : > { %v1136_v49 = vpop.permute.xlu0 %1135 }
 0x5c0   : > { %2110 = vmatpush3.bf16.msra.mxu1 %v1130_v40 }
 0x5c1   : > { %2121 = vmatprep.subr.bf16.mxu1 %v2499_v3 }
 0x5c3   : > { %2112 = vmatmul.mubr.msk.bf16.vlgmr.msra.gmra.mxu1 %vm718_vm2, %v1128_v41  ;;  %v2284_v42 = vpop.eup %2283 }
 0x5c4   : > { %2123 = vmatprep.mubr.msk.bf16.mxu1 %vm2500_vm1, %v2499_v3  ;;  %v2836_v46 = vmul.f32 %v2284_v42, %v1075_v43 }
 0x5cb   : > { %v2286_v45 = vpop.eup %2285 }
 0x5cc   : > { %v2838_v47 = vmul.f32 %v2286_v45, %v1076_v44 }
 0x5ce   : > { %v1083_v48 = vpack.c.bf16 %v2838_v47, %v2836_v46 }
 0x5d0   : > { %2104 = vmatmul.mubr.msk.bf16.vlgmr.msra.gmra.mxu0 %vm718_vm2, %v1083_v48 }
 0x5d1   : > { %2117 = vmatprep.mubr.msk.bf16.mxu0 %vm2500_vm1, %v2499_v3 }
 0x683   : > { %v1175_v50 = vpop.f32.mrf.mxu1 }
 0x684   : > { %v1176_v51 = vadd.f32 %v1175_v50, %v1136_v49 }
 0x685   : > { %v2113_v52 = vpop.f32.mrf.mxu1 }
 0x686   : > { %v2845_v53 = vpack.c.bf16 %v1176_v51, %v1176_v51 }
 0x687   : > { %v1178_v54 = vpop.f32.mrf.mxu1 }
 0x688   : > { %v1179_v55 = vadd.f32 %v1178_v54, %v1136_v49  ;;  %v1190_v56 = vsel %vm718_vm2, %v2845_v53, 0 }
 0x689   : > { %v2114_v57 = vpop.f32.mrf.mxu1  ;;  %2116 = vmatpush3.bf16.xpose.msra.mxu0 %v1190_v56 }
 0x68a   : > { %v1185_v60 = vpack.c.bf16 %v1179_v55, %v1179_v55  ;;  %2127 = vmatprep.subr.bf16.mxu0 %v2499_v3 }
 0x68c   : > { %v1236_v61 = vsel %vm718_vm2, %v1185_v60, 0 }
 0x68d   : > { %2122 = vmatpush3.bf16.xpose.msra.mxu1 %v1236_v61 }
 0x68e   : > { %2133 = vmatprep.subr.bf16.mxu1 %v2499_v3 }
 0x690   : > { %v1121_v62 = vpop.f32.mrf.mxu0 }
 0x691   : > { %v1122_v63 = vadd.f32 %v2754_v8, %v1121_v62 }
 0x692   : > { %v2105_v0 = vpop.f32.mrf.mxu0 }
 0x693   : > { %v1182_v1 = vpack.c.bf16 %v1122_v63, %v1122_v63 }
 0x694   : > { %v1124_v7 = vpop.f32.mrf.mxu0 }
 0x695   : > { %v1125_v9 = vadd.f32 %v2754_v8, %v1124_v7  ;;  %2118 = vmatmul.mubr.msk.bf16.vlgmr.msra.gmra.mxu0 %vm718_vm2, %v1182_v1  ;;  %v672_v8 = vld [vmem:[%s3044_s2 + $0x1] sm:$0x1] }
 0x696   : > { %v2106_v10 = vpop.f32.mrf.mxu0  ;;  %2129 = vmatprep.mubr.msk.bf16.mxu0 %vm2500_vm1, %v2499_v3  ;;  %vm674_vm8 = vcmp.eq.s32.totalorder %v672_v8, 0 }
 0x697   : > { %v1183_v11 = vpack.c.bf16 %v1125_v9, %v1125_v9  ;;  %v1279_v16 = vsel %vm674_vm8, 1, %v2503_v5  ;;  %v2269_v5 = vld [vmem:[%s2705_s13 + $0x8] sm:$0xff]  }
 0x698   : > { %v1287_v17 = vrot.slane %v1279_v16, %v1282_v14 }
 0x699   : > { %2124 = vmatmul.mubr.msk.bf16.vlgmr.msra.gmra.mxu1 %vm718_vm2, %v1183_v11 }
 0x69a   : > { %2135 = vmatprep.mubr.msk.bf16.mxu1 %vm2500_vm1, %v2499_v3  ;;  %vm1289_vm10 = vcmp.eq.s32.totalorder %v1287_v17, 1 }
 0x755   : > { %v1226_v18 = vpop.f32.mrf.mxu0 }
 0x756   : > { %v1290_v19 = vsel %vm1288_vm9, 1e-09, %v1226_v18 }
 0x757   : > { %v2119_v20 = vpop.f32.mrf.mxu0  ;;  %v1292_v21 = vsel %vm867_vm4, %v1290_v19, -inf }
 0x758   : > { %1293 = vmax.xlane.f32.xlu0 %v1292_v21 }
 0x759   : > { %v1229_v23 = vpop.f32.mrf.mxu0  ;;  %v1272_v24 = vpop.f32.mrf.mxu1 }
 0x75a   : > { %v1291_v25 = vsel %vm1289_vm10, 1e-09, %v1272_v24 }
 0x75b   : > { %v2120_v26 = vpop.f32.mrf.mxu0  ;;  %v2125_v27 = vpop.f32.mrf.mxu1  ;;  %v1295_v22 = vsel %vm867_vm4, %v1291_v25, -inf }
 0x75c   : > { %1296 = vmax.xlane.f32.xlu1 %v1295_v22 }
 0x75d   : > { %v1275_v28 = vpop.f32.mrf.mxu1 }
 0x75f   : > { %v2126_v29 = vpop.f32.mrf.mxu1 }
 0x76d   : > { %1366 = vrot.lane.b32.xlu1 %v1185_v60, %s2501_s30 }
 0x7e1   : > { %v1294_v30 = vpop.xlane.xlu0 %1293 }
 0x7e2   : > { %v1298_v31 = vsub.f32 %v1290_v19, %v1294_v30 }
 0x7e4   : > { %v1300_v32 = vmul.f32 1.442695, %v1298_v31 }
 0x7e5   : > { %v1297_v33 = vpop.xlane.xlu1 %1296 }
 0x7e6   : > { %2287 = vpow2.f32 %v1300_v32  ;;  %v1299_v34 = vsub.f32 %v1291_v25, %v1297_v33 }
 0x7e8   : > { %v1302_v35 = vmul.f32 1.442695, %v1299_v34 }
 0x7e9   : > { %v1367_v36 = vpop.permute.xlu1 %1366 }
 0x7ea   : > { %2289 = vpow2.f32 %v1302_v35  ;;  %v1372_v37 = vsel %vm897_vm5, %v1367_v36, 0  ;;  %v2272_v36 = vld [vmem:[%s2715_s0 + $0x10] sm:$0xff]  }
 0x7eb   : > { %2134 = vmatpush3.bf16.msra.mxu1 %v1372_v37  ;;  %v2273_v37 = vld [vmem:[%s2715_s0 + $0x8] sm:$0xff]  }
 0x7ec   : > { %2147 = vmatprep.subr.bf16.mxu1 %v2499_v3 }
 0x7f3   : > { %v2288_v4 = vpop.eup %2287 }
 0x7f4   : > { %v1304_v38 = vsel %vm867_vm4, %v2288_v4, 0.0 }
 0x7f5   : > { %1305 = vadd.xlane.f32.xlu0 %v1304_v38  ;;  %v1994_v38 = vld [vmem:[%s640_s25] ss:$0 sm:$0xff]  ;;  %s2018_s25 = sshll.u32 %s2485_s28, 7 }
 0x7f6   : > { %s2945_s11 = scalar_lea.hbm %s3054_s12, %s2018_s25 }
 0x7f7   : > { %v2290_v2 = vpop.eup %2289 }
 0x7f8   : > { %v1307_v39 = vsel %vm867_vm4, %v2290_v2, 0.0 }
 0x7f9   : > { %1308 = vadd.xlane.f32.xlu0 %v1307_v39 }
 0x80f   : > { %1317 = vrot.lane.b32.xlu0 %v2845_v53, %s2501_s30  ;;  %s1706_s30 = sshll.u32 %s2721_s26, 4  ;;  %s2948_s30 = int_to_ptr.vmem [resolvable:$true] %s1706_s30 }
 0x810   : > { %s2355_s17 = scalar_lea.vmem %s2948_s30, 128  ;;  %p2362_p1 = scmp.lt.s32.totalorder %s2948_s30, %s2360_s22 }
 0x811   : > { %p2356_p13 = scmp.ne.s32.totalorder %s2948_s30, %s2355_s17  ;;  %p2363_p3 = scmp.lt.s32.totalorder %s2361_s24, %s2355_s17 }
 0x813   : > { %p2357_p9 = pnand %p2356_p13, %p2622_p4  ;;  %p2364_p6 = por %p2363_p3, %p2362_p1 }
 0x815   : > { %p2358_p12 = pneg %p2357_p9 }
 0x817   : > { %p2365_p5 = pnand %p2364_p6, %p2358_p12 }
 0x87e   : > { %v1306_v40 = vpop.xlane.xlu0 %1305 }
 0x87f   : > { %2291 = vrcp.f32 %v1306_v40 }
 0x882   : > { %v1309_v41 = vpop.xlane.xlu0 %1308 }
 0x883   : > { %2293 = vrcp.f32 %v1309_v41 }
 0x886   : > { %v1318_v42 = vpop.permute.xlu0 %1317 }
 0x887   : > { %v1323_v43 = vsel %vm897_vm5, %v1318_v42, 0 }
 0x888   : > { %2128 = vmatpush3.bf16.msra.mxu0 %v1323_v43 }
 0x889   : > { %2139 = vmatprep.subr.bf16.mxu0 %v2499_v3 }
 0x88c   : > { %v2292_v44 = vpop.eup %2291 }
 0x88d   : > { %v1312_v45 = vmul.f32 %v2292_v44, %v2288_v4  ;;  %v2274_v4 = vld [vmem:[%s2715_s0] sm:$0xff]  }
 0x88f   : > { %v1314_v48 = vpack.c.bf16 %v1312_v45, %v1312_v45 }
 0x890   : > { %v2294_v49 = vpop.eup %2293 }
 0x891   : > { %2130 = vmatmul.mubr.msk.bf16.vlgmr.msra.gmra.mxu0 %vm867_vm4, %v1314_v48  ;;  %1667 = vst.msk [vmem:[%s2723_s20] sm:$0xf] %vm1664_vm6, %v1314_v48  ;;  %v1313_v50 = vmul.f32 %v2294_v49, %v2290_v2 }
 0x892   : > { %2140 = vmatpush3.bf16.msra.mxu0 %v2798_v58  ;;  %2143 = vmatprep.mubr.msk.bf16.mxu0 %vm2500_vm1, %v2499_v3 }
 0x893   : > { %v1315_v51 = vpack.c.bf16 %v1313_v50, %v1313_v50  ;;  %2141 = vmatprep.subr.bf16.mxu0 %v2499_v3 }
 0x895   : > { %2136 = vmatmul.mubr.msk.bf16.vlgmr.msra.gmra.mxu1 %vm867_vm4, %v1315_v51  ;;  %1668 = vst.msk [vmem:[%s2723_s20 + $0x4] sm:$0xf] %vm1664_vm6, %v1315_v51 }
 0x896   : > { %2142 = vmatpush3.bf16.msra.mxu0 %v2803_v59  ;;  %2151 = vmatprep.mubr.msk.bf16.mxu1 %vm2500_vm1, %v2499_v3 }
 0x897   : > { %2155 = vmatprep.subr.bf16.mxu0 %v2499_v3  ;;  %2148 = vmatpush3.bf16.msra.mxu1 %v2269_v5 }
 0x898   : > { %2149 = vmatprep.subr.bf16.mxu1 %v2499_v3 }
 0x89b   : > { %2150 = vmatpush3.bf16.msra.mxu1 %v2270_v6 }
 0x951   : > { %v1359_v52 = vpop.f32.mrf.mxu0 }
 0x952   : > { %v1360_v55 = vadd.f32 %v1359_v52, %v2836_v46 }
 0x953   : > { %v2131_v53 = vpop.f32.mrf.mxu0 }
 0x955   : > { %v1362_v58 = vpop.f32.mrf.mxu0  ;;  %v1408_v54 = vpop.f32.mrf.mxu1 }
 0x956   : > { %v1409_v56 = vadd.f32 %v1408_v54, %v2838_v47 }
 0x957   : > { %v2132_v57 = vpop.f32.mrf.mxu0  ;;  %v2137_v60 = vpop.f32.mrf.mxu1 }
 0x958   : > { %v1414_v61 = vpack.c.bf16 %v1409_v56, %v1360_v55 }
 0x959   : > { %v1411_v62 = vpop.f32.mrf.mxu1 }
 0x95a   : > { %2144 = vmatmul.mubr.msk.bf16.vlgmr.msra.gmra.mxu0 %vm718_vm2, %v1414_v61 }
 0x95b   : > { %v2138_v59 = vpop.f32.mrf.mxu1  ;;  %2163 = vmatprep.mubr.msk.bf16.mxu0 %vm2500_vm1, %v2499_v3  ;;  %2156 = vmatpush3.bf16.msra.mxu0 %v2271_v15 }
 0x95c   : > { %2157 = vmatprep.subr.bf16.mxu0 %v2499_v3 }
 0x95f   : > { %2158 = vmatpush3.bf16.msra.mxu0 %v2272_v36 }
 0x960   : > { %2159 = vmatprep.subr.bf16.mxu0 %v2499_v3 }
 0x963   : > { %2160 = vmatpush3.bf16.msra.mxu0 %v2273_v37 }
 0x964   : > { %2161 = vmatprep.subr.bf16.mxu0 %v2499_v3  ;;  %v1998_v3 = vld [vmem:[%s648_s1] ss:$0 sm:$0xff] }
 0x967   : > { %2162 = vmatpush3.bf16.msra.mxu0 %v2274_v4 }
 0xa1a   : > { %v1452_v63 = vpop.f32.mrf.mxu0 }
 0xa1b   : > { %v1453_v0 = vadd.f32 %v2817_v13, %v1452_v63 }
 0xa1c   : > { %v2145_v1 = vpop.f32.mrf.mxu0 }
 0xa1d   : > { %v1459_v46 = vsel %vm718_vm2, %v1453_v0, 0.0  ;;  %v1467_v7 = vmul.f32 %v1453_v0, %v1453_v0 }
 0xa1e   : > { %1460 = vadd.xlane.f32.xlu0 %v1459_v46  ;;  %v1455_v47 = vpop.f32.mrf.mxu0 }
 0xa1f   : > { %v1456_v9 = vadd.f32 %v2817_v13, %v1455_v47  ;;  %v1469_v11 = vsel %vm718_vm2, %v1467_v7, 0.0 }
 0xa20   : > { %v2146_v10 = vpop.f32.mrf.mxu0 }
 0xa21   : > { %v1462_v12 = vsel %vm718_vm2, %v1456_v9, 0.0  ;;  %v1468_v8 = vmul.f32 %v1456_v9, %v1456_v9 }
 0xa22   : > { %1470 = vadd.xlane.f32.xlu0 %v1469_v11  ;;  %1463 = vadd.xlane.f32.xlu1 %v1462_v12 }
 0xa23   : > { %v1472_v14 = vsel %vm718_vm2, %v1468_v8, 0.0 }
 0xa26   : > { %1473 = vadd.xlane.f32.xlu0 %v1472_v14 }
 0xaa7   : > { %v1461_v13 = vpop.xlane.xlu0 %1460 }
 0xaa8   : > { %v1465_v16 = vmul.f32 0.03125, %v1461_v13 }
 0xaaa   : > { %v1477_v19 = vmul.f32 %v1465_v16, %v1465_v16  ;;  %v1481_v30 = vsub.f32 %v1453_v0, %v1465_v16 }
 0xaab   : > { %v1471_v17 = vpop.xlane.xlu0 %1470  ;;  %v1464_v18 = vpop.xlane.xlu1 %1463 }
 0xaac   : > { %v1475_v20 = vmul.f32 0.03125, %v1471_v17  ;;  %v1466_v21 = vmul.f32 0.03125, %v1464_v18 }
 0xaae   : > { %v1479_v23 = vsub.f32 %v1475_v20, %v1477_v19  ;;  %v1478_v26 = vmul.f32 %v1466_v21, %v1466_v21  ;;  %v1482_v31 = vsub.f32 %v1456_v9, %v1466_v21 }
 0xaaf   : > { %v1474_v24 = vpop.xlane.xlu0 %1473 }
 0xab0   : > { %v1483_v25 = vadd.f32 1e-05, %v1479_v23  ;;  %v1476_v27 = vmul.f32 0.03125, %v1474_v24 }
 0xab2   : > { %v1480_v22 = vsub.f32 %v1476_v27, %v1478_v26  ;;  %2295 = vrsqrt.f32 %v1483_v25 }
 0xab4   : > { %v1484_v28 = vadd.f32 1e-05, %v1480_v22 }
 0xab6   : > { %2297 = vrsqrt.f32 %v1484_v28 }
 0xabf   : > { %v2296_v29 = vpop.eup %2295 }
 0xac0   : > { %v1487_v33 = vmul.f32 %v2296_v29, %v1481_v30 }
 0xac3   : > { %v2298_v32 = vpop.eup %2297 }
 0xac4   : > { %v1488_v34 = vmul.f32 %v2298_v32, %v1482_v31 }
 0xac6   : > { %v1489_v35 = vpack.c.bf16 %v1488_v34, %v1487_v33 }
 0xac8   : > { %2152 = vmatmul.mubr.msk.bf16.vlgmr.msra.gmra.mxu1 %vm718_vm2, %v1489_v35 }
 0xb88   : > { %v1545_v2 = vpop.f32.mrf.mxu1 }
 0xb89   : > { %v1546_v40 = vadd.f32 %v1994_v38, %v1545_v2 }
 0xb8a   : > { %v2153_v39 = vpop.f32.mrf.mxu1 }
 0xb8b   : > { %v1552_v44 = vmax.f32 %v1546_v40, 0.0 }
 0xb8c   : > { %v1548_v41 = vpop.f32.mrf.mxu1 }
 0xb8d   : > { %v1549_v42 = vadd.f32 %v1994_v38, %v1548_v41 }
 0xb8e   : > { %v2154_v43 = vpop.f32.mrf.mxu1 }
 0xb8f   : > { %v1553_v45 = vmax.f32 %v1549_v42, 0.0 }
 0xb91   : > { %v1554_v48 = vpack.c.bf16 %v1553_v45, %v1552_v44 }
 0xb93   : > { %2164 = vmatmul.mubr.msk.bf16.vlgmr.msra.gmra.mxu0 %vm1585_vm11, %v1554_v48 }
 0xc53   : > { %v1623_v49 = vpop.f32.mrf.mxu0 }
 0xc54   : > { %v1624_v50 = vadd.f32 %v1998_v3, %v1623_v49 }
 0xc55   : > { %v2165_v51 = vpop.f32.mrf.mxu0 }
 0xc56   : > { %v2924_v52 = vadd.f32 %v1624_v50, %v1487_v33 }
 0xc57   : > { %v1626_v53 = vpop.f32.mrf.mxu0 }
 0xc58   : > { %v1627_v58 = vadd.f32 %v1998_v3, %v1626_v53  ;;  %v1632_v54 = vsel %vm718_vm2, %v2924_v52, 0.0  ;;  %v1640_v55 = vmul.f32 %v2924_v52, %v2924_v52 }
 0xc59   : > { %1633 = vadd.xlane.f32.xlu1 %v1632_v54  ;;  %v2166_v56 = vpop.f32.mrf.mxu0 }
 0xc5a   : > { %v2930_v57 = vadd.f32 %v1627_v58, %v1488_v34  ;;  %v1642_v60 = vsel %vm718_vm2, %v1640_v55, 0.0 }
 0xc5c   : > { %v1635_v61 = vsel %vm718_vm2, %v2930_v57, 0.0  ;;  %v1641_v62 = vmul.f32 %v2930_v57, %v2930_v57 }
 0xc5d   : > { %1643 = vadd.xlane.f32.xlu1 %v1642_v60  ;;  %1636 = vadd.xlane.f32.xlu0 %v1635_v61 }
 0xc5e   : > { %v1645_v59 = vsel %vm718_vm2, %v1641_v62, 0.0 }
 0xc61   : > { %1646 = vadd.xlane.f32.xlu0 %v1645_v59 }
 0xc62   : > { %2368 = shalt.err (!%p2365_p5)
}
 0xc63   : > { %s2369_s26 = scalar_lea.hbm %s2945_s11, 128  ;;  %s2373_s13 = scalar_lea.hbm %s3054_s12, 256 }
 0xc64   : > { %p2370_p7 = scmp.ne.s32.totalorder %s2945_s11, %s2369_s26  ;;  %p2374_p8 = scmp.lt.s32.totalorder %s2945_s11, %s3054_s12 }
 0xc65   : > { %p2375_p11 = scmp.lt.s32.totalorder %s2373_s13, %s2369_s26 }
 0xc66   : > { %p2371_p2 = pnand %p2370_p7, %p2622_p4 }
 0xc67   : > { %p2376_p10 = por %p2375_p11, %p2374_p8 }
 0xc68   : > { %p2372_p0 = pneg %p2371_p2 }
 0xc6a   : > { %p2377_p13 = pnand %p2376_p10, %p2372_p0 }
 0xc6c   : > { %2380 = shalt.err (!%p2377_p13)
}
 0xc6d   : > { %s2505_s5 = smov 4   ;;  %s3094_s1 = sld [smem:[#allocation27_spill]] }
 0xc6e   : > { %2177 = dma.vmem_to_hbm [thread:$0]  (%p2622_p4), %s2948_s30, 128, %s2945_s11, %s2950_s21, %s2502_s29, %s2502_s29, %s2505_s5  }
 0xc6f   : > { %s1724_s27 = sshll.u32 %s2723_s20, 4  ;;  %s2506_s24 = smov [#allocation10]   ;;  %s1725_s27 = int_to_ptr.vmem [resolvable:$true] %s1724_s27 }
 0xc70   : > { %s2381_s22 = scalar_lea.vmem %s1725_s27, 128  ;;  %s2385_s26 = sshll.u32 %s2506_s24, 4  ;;  %s2386_s26 = int_to_ptr.vmem [resolvable:$false] %s2385_s26 }
 0xc71   : > { %p2382_p9 = scmp.ne.s32.totalorder %s1725_s27, %s2381_s22  ;;  %s2387_s19 = scalar_lea.vmem %s2386_s26, 256 }
 0xc72   : > { %p2388_p3 = scmp.lt.s32.totalorder %s1725_s27, %s2386_s26  ;;  %p2389_p6 = scmp.lt.s32.totalorder %s2387_s19, %s2381_s22 }
 0xc73   : > { %s2981_s17 = scalar_lea.hbm %s3094_s1, %s2018_s25  ;;  %p2383_p12 = pnand %p2382_p9, %p2622_p4 }
 0xc74   : > { %p2390_p5 = por %p2389_p6, %p2388_p3 }
 0xc75   : > { %p2384_p1 = pneg %p2383_p12 }
 0xc77   : > { %p2391_p7 = pnand %p2390_p5, %p2384_p1 }
 0xc79   : > { %2394 = shalt.err (!%p2391_p7)
}
 0xc7a   : > { %s2395_s28 = scalar_lea.hbm %s2981_s17, 128  ;;  %s2399_s11 = scalar_lea.hbm %s3094_s1, 256 }
 0xc7b   : > { %p2396_p2 = scmp.ne.s32.totalorder %s2981_s17, %s2395_s28  ;;  %p2400_p11 = scmp.lt.s32.totalorder %s2981_s17, %s3094_s1 }
 0xc7c   : > { %p2401_p10 = scmp.lt.s32.totalorder %s2399_s11, %s2395_s28 }
 0xc7d   : > { %p2397_p0 = pnand %p2396_p2, %p2622_p4 }
 0xc7e   : > { %p2402_p13 = por %p2401_p10, %p2400_p11 }
 0xc7f   : > { %p2398_p8 = pneg %p2397_p0 }
 0xc81   : > { %p2403_p9 = pnand %p2402_p13, %p2398_p8 }
 0xc83   : > { %2406 = shalt.err (!%p2403_p9)
}
 0xc84   : > { %2178 = dma.vmem_to_hbm [thread:$0]  (%p2622_p4), %s1725_s27, 128, %s2981_s17, %s2950_s21, %s2502_s29, %s2502_s29, %s2505_s5  }
 0xc85   : > { %s2507_s18 = smov [#allocation7]   ;;  %p3095_p12 = scmp.eq.s32.totalorder %s2609_s14, 1 }
 0xc86   : > { %s1688_s29 = sshll.u32 %s2507_s18, 4  ;;  %s1689_s29 = int_to_ptr.vmem [resolvable:$true] %s1688_s29 }
 0xc87   : > { %s2407_s21 = scalar_lea.vmem %s1689_s29, 256  ;;  %p2414_p6 = scmp.lt.s32.totalorder %s1689_s29, %s1689_s29 }
 0xc88   : > { %p2408_p4 = scmp.ne.s32.totalorder %s1689_s29, %s2407_s21  ;;  %p2415_p5 = scmp.lt.s32.totalorder %s2407_s21, %s2407_s21 }
 0xc8a   : > { %p2409_p1 = pnand %p2408_p4, %p3095_p12  ;;  %p2416_p7 = por %p2415_p5, %p2414_p6 }
 0xc8c   : > { %p2410_p3 = pneg %p2409_p1 }
 0xc8e   : > { %p2417_p2 = pnand %p2416_p7, %p2410_p3 }
 0xce2   : > { %v1634_v63 = vpop.xlane.xlu1 %1633 }
 0xce3   : > { %v1638_v0 = vmul.f32 0.03125, %v1634_v63 }
 0xce5   : > { %v1650_v7 = vmul.f32 %v1638_v0, %v1638_v0  ;;  %v1654_v15 = vsub.f32 %v2924_v52, %v1638_v0 }
 0xce6   : > { %v1644_v1 = vpop.xlane.xlu1 %1643  ;;  %v1637_v46 = vpop.xlane.xlu0 %1636 }
 0xce7   : > { %v1648_v47 = vmul.f32 0.03125, %v1644_v1  ;;  %v1639_v9 = vmul.f32 0.03125, %v1637_v46 }
 0xce9   : > { %v1652_v10 = vsub.f32 %v1648_v47, %v1650_v7  ;;  %v1651_v8 = vmul.f32 %v1639_v9, %v1639_v9  ;;  %v1655_v17 = vsub.f32 %v2930_v57, %v1639_v9 }
 0xcea   : > { %v1647_v11 = vpop.xlane.xlu0 %1646 }
 0xceb   : > { %v1656_v12 = vadd.f32 1e-05, %v1652_v10  ;;  %v1649_v14 = vmul.f32 0.03125, %v1647_v11 }
 0xced   : > { %2299 = vrsqrt.f32 %v1656_v12  ;;  %v1653_v5 = vsub.f32 %v1649_v14, %v1651_v8 }
 0xcef   : > { %v1657_v6 = vadd.f32 1e-05, %v1653_v5 }
 0xcf1   : > { %2301 = vrsqrt.f32 %v1657_v6 }
 0xcfa   : > { %v2300_v13 = vpop.eup %2299 }
 0xcfb   : > { %v1660_v16 = vmul.f32 %v2300_v13, %v1654_v15 }
 0xcfd   : > { %1662 = vst.msk [vmem:[#allocation7] sm:$0xff] %vm718_vm2, %v1660_v16 }
 0xcfe   : > { %v2302_v18 = vpop.eup %2301 }
 0xcff   : > { %v1661_v19 = vmul.f32 %v2302_v18, %v1655_v17 }
 0xd01   : > { %1663 = vst.msk [vmem:[#allocation7 + $0x8] sm:$0xff] %vm718_vm2, %v1661_v19 }
 0xd02   : > { %2420 = shalt.err (!%p2417_p2)
}
 0xd03   : > { %s2508_s13 = smov 128   ;;  %s2509_s15 = smov 8  }
 0xd04   : > { %p3096_p0 = pmov %p3095_p12  ;;  %s3097_s16 = sld [smem:[#allocation26_spill]] }
 0xd06   : > { %p3098_p8 = pmov %p3096_p0 }
 0xd0a   : > { %2176 = dma.vmem_to_hbm [thread:$0]  (%p3096_p0), %s1689_s29, 256, %s3097_s16, [#allocation4], %s2508_s13, %s2508_s13, %s2509_s15  }
 0xd0b   : > { %2464 = dma.done.wait (%p3098_p8), [#allocation4], 256   ;;  %p3099_p11 = pmov %p3096_p0 }
 0xd0d   : > { %2466 = vsyncadd (%p3099_p11), [#allocation4], 4294967040 }
 0xd0e PF: > { %s3100_s0 = sld [smem:[#allocation18_spill]] }
 0xd0f   : > { %s3101_s17 = sld [smem:[#allocation20_spill]] }
 0xd14   : > { %p2203_p10 = scmp.ge.s32.totalorder %s3100_s0, 2  ;;  %s3102_s27 = sadd.s32 4294967294, %s3100_s0  }
 0xd15   : > { %s1743_s22 = sand.u32 1, %s3102_s27   ;;  %p3103_p13 = scmp.ne.s32.totalorder %s3101_s17, 0 }
 0xd16   : > { %s1744_s24 = scalar_lea.sflag [#allocation9], %s1743_s22 }
 0xd17   : > { %p2191_p9 = pnand %p2203_p10, %p3103_p13 }
 0xd19   : > { %p2192_p4 = pneg %p2191_p9 }
 0xd1b   : > { %2468 = dma.done.wait (%p2192_p4), %s1744_s24, 256  }
 0xd1c   : > { %2470 = vsyncadd (%p2192_p4), %s1744_s24, 4294967040  ;;  %s30_s30 = sadd.s32 1, %s3100_s0   ;;  %s3104_s25 = sld [smem:[#allocation15_spill]] }
 0xd1d   : > { %p27_p12 = scmp.ge.s32.totalorder %s30_s30, 4   ;;  %s3105_s26 = sld [smem:[#allocation16_spill]] }
 0xd1e   : > { %s3106_s27 = sld [smem:[#allocation21_spill]] }
 0xd1f   : > { %s3107_s28 = sld [smem:[#allocation17_spill]]  ;;  %29 = sbr.rel (!%p27_p12) target bundleno = 14 (0xe), region = 163 }
 0xd20   : > { %s3108_s29 = sld [smem:[#allocation19_spill]] }
 0xd24   :  { %1758 = vsyncpa [#allocation3], 1 }
 0xd25   :  { %1760 = vsyncpa [#allocation3 + $0x1], 1 }
 0xd26   :  { %1761 = vsyncpa [#allocation6], 1 }
 0xd27   :  { %1762 = vsyncpa [#allocation4], 1 }
 0xd28   :  { %1764 = vsyncpa [#allocation4 + $0x1], 1 }
 0xd29   :  { %1765 = vsyncpa [#allocation9], 1 }
 0xd2a   :  { %1767 = vsyncpa [#allocation9 + $0x1], 1 }

</bundles_post_ra>
